<compile_context>
chip_gen: v7x
topology: tpu7x:2x2x1
jax: 0.10.0
libtpu: 0.0.40
codegen_flags: <defaults>
</compile_context>

<pallas_src>
import functools

import numpy as np
import jax
import jax.numpy as jnp
from jax import lax
from jax.experimental import pallas as pl
from jax.experimental.pallas import tpu as pltpu


def _causal_conv3d_kernel(x_ref, w_ref, b_ref, m_ref, o_ref, taps_ref, *,
                          KT, KH, KW, H, W, Cin, Cout, TB, Gr, Gr_pad):
    """One grid step = TB output time steps of one batch element.

    x_ref    : (1, TB, Cin, HW)        new input frames [t0, t0+TB)
    w_ref    : (KT, Cout, Gr_pad)      per-time-tap weight blocks (rows kh,kw,cin)
    b_ref    : (Cout, 1)
    m_ref    : (Gr_pad, HW)            zero-halo masks, pre-broadcast over Cin
    o_ref    : (1, Cout, TB*HW)        lane-dense output slab
    taps_ref : (Gr_pad, (TB+KT-1)*HW)  rolled+masked taps, time along lanes;
                                       columns [0, (KT-1)*HW) carry history.
    """
    HW = H * W
    hp, wp = KH // 2, KW // 2
    tb = pl.program_id(1)
    HIST = (KT - 1) * HW

    if KT > 1:
        # Causal zero padding == zero history at the first time block.
        @pl.when(tb == 0)
        def _():
            taps_ref[:, 0:HIST] = jnp.zeros((Gr_pad, HIST), taps_ref.dtype)

    m_all = m_ref[...]            # (Gr_pad, HW) -- hoisted, applied once/frame

    # ---- roll + mask every new frame exactly once ----
    for s in range(TB):                      # static unroll (TB is small)
        slab = x_ref[0, s]                   # (Cin, HW)
        pieces = []
        for kh in range(KH):
            for kw in range(KW):
                # Flat-lane shift for tap (kh, kw); wrapped lanes are always
                # spatially out-of-bounds and zeroed by the halo mask, so a
                # circular roll realizes the zero-padded 2-D window exactly.
                shift = (kh - hp) * W + (kw - wp)
                pieces.append(slab if shift == 0 else
                              pltpu.roll(slab, shift=(-shift) % HW, axis=1))
        if Gr_pad > Gr:
            pieces.append(jnp.zeros((Gr_pad - Gr, HW), slab.dtype))
        block = jnp.concatenate(pieces, axis=0) * m_all      # (Gr_pad, HW)
        col = (KT - 1 + s) * HW
        taps_ref[:, col:col + HW] = block    # full (8,128)-tile aligned store

    # ---- KT accumulating MXU dots over the whole TB-wide lane window ----
    acc = jnp.zeros((Cout, TB * HW), jnp.float32)
    for kt in range(KT):
        acc = acc + jnp.dot(w_ref[kt],
                            taps_ref[:, kt * HW:kt * HW + TB * HW],
                            preferred_element_type=jnp.float32)
    res = acc + b_ref[...].astype(jnp.float32)      # bias added once per block
    o_ref[0] = res.astype(o_ref.dtype)              # one unmasked lane-dense vst

    if KT > 1:
        # Carry the last KT-1 (already rolled+masked) frames to the next block.
        @pl.when(tb + 1 < pl.num_programs(1))
        def _():
            hist = taps_ref[:, TB * HW:TB * HW + HIST]   # load then store (safe)
            taps_ref[:, 0:HIST] = hist


def _pick_time_block(T, HW, max_tb):
    # Largest divisor of T (<= max_tb) whose output slab stays lane-aligned;
    # otherwise fall back to the whole time axis (full-dim blocks are legal).
    for d in range(min(max_tb, T), 0, -1):
        if T % d == 0 and (d * HW) % 128 == 0:
            return d
    return T


def causal_conv3d_plain_ar(x, weight, bias, *, pad_mode="constant",
                           time_block=8):
    """Forward pass of CausalConv3dPlainAR (stride=1, dilation=1, bias=True).

    x      : (N, C_in, T, H, W)          (PyTorch NCDHW)
    weight : (C_out, C_in, KT, KH, KW)   (PyTorch Conv3d weight layout)
    bias   : (C_out,)
    returns: (N, C_out, T, H, W)
    """
    N, Cin, T, H, W = x.shape
    Cout, Cin_w, KT, KH, KW = weight.shape
    assert Cin_w == Cin
    assert KH % 2 == 1 and KW % 2 == 1
    HW = H * W
    hp, wp = KH // 2, KW // 2
    assert hp < H and wp < W   # required for the roll+halo-mask equivalence

    time_pad = KT - 1          # dilation*(KT-1) + max(1 - stride, 0)
    mode = pad_mode if time_pad < T else "constant"
    # TODO(synk): only 'constant' pad_mode (the module default) is implemented;
    # 'replicate'/'reflect' time padding is not translated.
    assert mode == "constant"

    Gr = KH * KW * Cin
    Gr_pad = ((Gr + 7) // 8) * 8          # 8-sublane-aligned tap-row count

    # TODO(synk): this transpose is a standalone HBM round trip of the input;
    # if the upstream producer can emit (N, T, Cin, H*W) directly, drop it.
    xk = jnp.transpose(x.reshape(N, Cin, T, HW), (0, 2, 1, 3))
    # Weight blocks per time tap, rows ordered (kh, kw, cin), padded to Gr_pad.
    wk = jnp.transpose(weight, (2, 0, 3, 4, 1)).reshape(KT, Cout, Gr)
    wk = jnp.pad(wk, ((0, 0), (0, 0), (0, Gr_pad - Gr)))
    bk = bias.reshape(Cout, 1)

    # Zero-halo masks pre-broadcast over Cin so the kernel applies them with a
    # single (Gr_pad, HW) multiply and never sublane-broadcasts in the loop.
    q = np.arange(HW)
    h_idx, w_idx = q // W, q % W
    masks_np = np.zeros((Gr_pad, HW), np.float32)
    for kh in range(KH):
        for kw in range(KW):
            dh, dw = kh - hp, kw - wp
            ok = ((h_idx + dh >= 0) & (h_idx + dh < H) &
                  (w_idx + dw >= 0) & (w_idx + dw < W))
            j = kh * KW + kw
            masks_np[j * Cin:(j + 1) * Cin, :] = ok[None, :].astype(np.float32)
    mk = jnp.asarray(masks_np, dtype=x.dtype)

    TB = _pick_time_block(T, HW, time_block)

    kernel = functools.partial(
        _causal_conv3d_kernel, KT=KT, KH=KH, KW=KW, H=H, W=W,
        Cin=Cin, Cout=Cout, TB=TB, Gr=Gr, Gr_pad=Gr_pad)

    # VMEM sizing from the actual windowed blocks (+2x headroom).
    elt = x.dtype.itemsize
    vmem_est = elt * (2 * TB * Cin * HW             # input block (double-buffered)
                      + 2 * Cout * TB * HW          # output block (double-buffered)
                      + Gr_pad * (TB + KT - 1) * HW # taps scratch
                      + KT * Cout * Gr_pad + Cout + Gr_pad * HW)
    vmem_limit = int(min(100 * 1024 * 1024, max(8 * 1024 * 1024, 2 * vmem_est)))

    # TODO(synk): optionally cast taps/weights to bf16 for the MXU on v6e/v7x
    # once channel counts are large enough for the dot to matter.
    out_flat = pl.pallas_call(
        kernel,
        out_shape=jax.ShapeDtypeStruct((N, Cout, T * HW), x.dtype),
        grid=(N, T // TB),
        in_specs=[
            pl.BlockSpec((1, TB, Cin, HW), lambda n, tb: (n, tb, 0, 0)),
            pl.BlockSpec((KT, Cout, Gr_pad), lambda n, tb: (0, 0, 0)),
            pl.BlockSpec((Cout, 1), lambda n, tb: (0, 0)),
            pl.BlockSpec((Gr_pad, HW), lambda n, tb: (0, 0)),
        ],
        out_specs=pl.BlockSpec((1, Cout, TB * HW), lambda n, tb: (n, 0, tb)),
        scratch_shapes=[pltpu.VMEM((Gr_pad, (TB + KT - 1) * HW), x.dtype)],
        compiler_params=pltpu.CompilerParams(
            # Time blocks carry history through the taps scratch -> arbitrary;
            # the batch axis is parallel so v7x's two TensorCores split over N.
            dimension_semantics=("parallel", "arbitrary"),
            vmem_limit_bytes=vmem_limit),
    )(xk, wk, bk, mk)

    return out_flat.reshape(N, Cout, T, H, W)


if __name__ == "__main__":
    # Small shapes consistent with the module: chan_in=4, chan_out=8, k=3.
    N, Cin, Cout, T, H, W = 2, 4, 8, 8, 16, 16
    KT = KH = KW = 3

    key = jax.random.PRNGKey(0)
    k1, k2, k3 = jax.random.split(key, 3)
    x = jax.random.normal(k1, (N, Cin, T, H, W), jnp.float32)
    weight = jax.random.normal(k2, (Cout, Cin, KT, KH, KW), jnp.float32) * 0.1
    bias = jax.random.normal(k3, (Cout,), jnp.float32) * 0.1

    y = causal_conv3d_plain_ar(x, weight, bias)
    y = jax.block_until_ready(y)
    assert y.shape == (N, Cout, T, H, W)

    # Cross-check against XLA's conv on the same causal padding.
    xp = jnp.pad(x, ((0, 0), (0, 0), (KT - 1, 0),
                     (KH // 2, KH // 2), (KW // 2, KW // 2)))
    ref = lax.conv_general_dilated(
        xp, weight, window_strides=(1, 1, 1), padding="VALID",
        dimension_numbers=("NCDHW", "OIDHW", "NCDHW"))
    ref = ref + bias[None, :, None, None, None]
    assert jnp.allclose(y, ref, rtol=2e-3, atol=2e-3)

    print("KERNEL_OK")
</pallas_src>

<mosaic_0001>
module attributes {stable_mosaic.version = 11 : i64} {
  func.func @_causal_conv3d_kernel(%arg0: i32, %arg1: i32, %arg2: memref<1x8x4x256xf32, #tpu.memory_space<vmem>>, %arg3: memref<3x8x40xf32, #tpu.memory_space<vmem>>, %arg4: memref<8x1xf32, #tpu.memory_space<vmem>>, %arg5: memref<40x256xf32, #tpu.memory_space<vmem>>, %arg6: memref<1x8x2048xf32, #tpu.memory_space<vmem>>, %arg7: memref<40x2560xf32, #tpu.memory_space<vmem>>) attributes {dimension_semantics = [#tpu.dimension_semantics<parallel>, #tpu.dimension_semantics<arbitrary>], iteration_bounds = array<i64: 2, 1>, scalar_prefetch = 0 : i64, scratch_operands = 1 : i64, tpu.core_type = #tpu.core_type<tc>, window_params = [{transform_indices = @transform_0, window_bounds = array<i64: 1, 8, 4, 256>}, {pipeline_mode = #tpu.pipeline_mode<synchronous>, transform_indices = @transform_1, window_bounds = array<i64: 3, 8, 40>}, {pipeline_mode = #tpu.pipeline_mode<synchronous>, transform_indices = @transform_2, window_bounds = array<i64: 8, 1>}, {pipeline_mode = #tpu.pipeline_mode<synchronous>, transform_indices = @transform_3, window_bounds = array<i64: 40, 256>}, {transform_indices = @transform_4, window_bounds = array<i64: 1, 8, 2048>}]} {
    %c0_i32 = arith.constant 0 : i32
    %0 = arith.cmpi eq, %arg1, %c0_i32 : i32
    %1 = arith.extui %0 : i1 to i32
    %c0_i32_0 = arith.constant 0 : i32
    %2 = arith.cmpi ne, %1, %c0_i32_0 : i32
    scf.if %2 {
      %cst_124 = arith.constant 0.000000e+00 : f32
      %142 = vector.broadcast %cst_124 : f32 to vector<40x512xf32>
      %c0_125 = arith.constant 0 : index
      %c0_126 = arith.constant 0 : index
      %143 = vector.load %arg7[%c0_125, %c0_126] : memref<40x2560xf32, #tpu.memory_space<vmem>>, vector<40x512xf32>
      tpu.vector_store %arg7[%c0_125, %c0_126], %142 {strides = array<i32>} : memref<40x2560xf32, #tpu.memory_space<vmem>>, vector<40x512xf32>,
    } else {
    }
    %c0 = arith.constant 0 : index
    %c0_1 = arith.constant 0 : index
    %3 = vector.load %arg5[%c0, %c0_1] : memref<40x256xf32, #tpu.memory_space<vmem>>, vector<40x256xf32>
    %c0_2 = arith.constant 0 : index
    %c0_3 = arith.constant 0 : index
    %c0_4 = arith.constant 0 : index
    %c0_5 = arith.constant 0 : index
    %4 = vector.load %arg2[%c0_2, %c0_3, %c0_4, %c0_5] : memref<1x8x4x256xf32, #tpu.memory_space<vmem>>, vector<1x1x4x256xf32>
    %5 = vector.shape_cast %4 : vector<1x1x4x256xf32> to vector<4x256xf32>
    %c17_i32 = arith.constant 17 : i32
    %6 = tpu.dynamic_rotate %5 by %c17_i32 dim 1 : vector<4x256xf32>, i32 -> vector<4x256xf32>
    %c16_i32 = arith.constant 16 : i32
    %7 = tpu.dynamic_rotate %5 by %c16_i32 dim 1 : vector<4x256xf32>, i32 -> vector<4x256xf32>
    %c15_i32 = arith.constant 15 : i32
    %8 = tpu.dynamic_rotate %5 by %c15_i32 dim 1 : vector<4x256xf32>, i32 -> vector<4x256xf32>
    %c1_i32 = arith.constant 1 : i32
    %9 = tpu.dynamic_rotate %5 by %c1_i32 dim 1 : vector<4x256xf32>, i32 -> vector<4x256xf32>
    %c255_i32 = arith.constant 255 : i32
    %10 = tpu.dynamic_rotate %5 by %c255_i32 dim 1 : vector<4x256xf32>, i32 -> vector<4x256xf32>
    %c241_i32 = arith.constant 241 : i32
    %11 = tpu.dynamic_rotate %5 by %c241_i32 dim 1 : vector<4x256xf32>, i32 -> vector<4x256xf32>
    %c240_i32 = arith.constant 240 : i32
    %12 = tpu.dynamic_rotate %5 by %c240_i32 dim 1 : vector<4x256xf32>, i32 -> vector<4x256xf32>
    %c239_i32 = arith.constant 239 : i32
    %13 = tpu.dynamic_rotate %5 by %c239_i32 dim 1 : vector<4x256xf32>, i32 -> vector<4x256xf32>
    %cst = arith.constant 0.000000e+00 : f32
    %14 = vector.broadcast %cst : f32 to vector<4x256xf32>
    %15 = tpu.concatenate %6, %7, %8, %9, %5, %10, %11, %12, %13, %14 in 0 : vector<4x256xf32>, vector<4x256xf32>, vector<4x256xf32>, vector<4x256xf32>, vector<4x256xf32>, vector<4x256xf32>, vector<4x256xf32>, vector<4x256xf32>, vector<4x256xf32>, vector<4x256xf32> -> vector<40x256xf32>
    %16 = arith.mulf %15, %3 : vector<40x256xf32>
    %c0_6 = arith.constant 0 : index
    %c512 = arith.constant 512 : index
    %17 = vector.load %arg7[%c0_6, %c512] : memref<40x2560xf32, #tpu.memory_space<vmem>>, vector<40x256xf32>
    tpu.vector_store %arg7[%c0_6, %c512], %16 {strides = array<i32>} : memref<40x2560xf32, #tpu.memory_space<vmem>>, vector<40x256xf32>,
    %c0_7 = arith.constant 0 : index
    %c1 = arith.constant 1 : index
    %c0_8 = arith.constant 0 : index
    %c0_9 = arith.constant 0 : index
    %18 = vector.load %arg2[%c0_7, %c1, %c0_8, %c0_9] : memref<1x8x4x256xf32, #tpu.memory_space<vmem>>, vector<1x1x4x256xf32>
    %19 = vector.shape_cast %18 : vector<1x1x4x256xf32> to vector<4x256xf32>
    %c17_i32_10 = arith.constant 17 : i32
    %20 = tpu.dynamic_rotate %19 by %c17_i32_10 dim 1 : vector<4x256xf32>, i32 -> vector<4x256xf32>
    %c16_i32_11 = arith.constant 16 : i32
    %21 = tpu.dynamic_rotate %19 by %c16_i32_11 dim 1 : vector<4x256xf32>, i32 -> vector<4x256xf32>
    %c15_i32_12 = arith.constant 15 : i32
    %22 = tpu.dynamic_rotate %19 by %c15_i32_12 dim 1 : vector<4x256xf32>, i32 -> vector<4x256xf32>
    %c1_i32_13 = arith.constant 1 : i32
    %23 = tpu.dynamic_rotate %19 by %c1_i32_13 dim 1 : vector<4x256xf32>, i32 -> vector<4x256xf32>
    %c255_i32_14 = arith.constant 255 : i32
    %24 = tpu.dynamic_rotate %19 by %c255_i32_14 dim 1 : vector<4x256xf32>, i32 -> vector<4x256xf32>
    %c241_i32_15 = arith.constant 241 : i32
    %25 = tpu.dynamic_rotate %19 by %c241_i32_15 dim 1 : vector<4x256xf32>, i32 -> vector<4x256xf32>
    %c240_i32_16 = arith.constant 240 : i32
    %26 = tpu.dynamic_rotate %19 by %c240_i32_16 dim 1 : vector<4x256xf32>, i32 -> vector<4x256xf32>
    %c239_i32_17 = arith.constant 239 : i32
    %27 = tpu.dynamic_rotate %19 by %c239_i32_17 dim 1 : vector<4x256xf32>, i32 -> vector<4x256xf32>
    %cst_18 = arith.constant 0.000000e+00 : f32
    %28 = vector.broadcast %cst_18 : f32 to vector<4x256xf32>
    %29 = tpu.concatenate %20, %21, %22, %23, %19, %24, %25, %26, %27, %28 in 0 : vector<4x256xf32>, vector<4x256xf32>, vector<4x256xf32>, vector<4x256xf32>, vector<4x256xf32>, vector<4x256xf32>, vector<4x256xf32>, vector<4x256xf32>, vector<4x256xf32>, vector<4x256xf32> -> vector<40x256xf32>
    %30 = arith.mulf %29, %3 : vector<40x256xf32>
    %c0_19 = arith.constant 0 : index
    %c768 = arith.constant 768 : index
    %31 = vector.load %arg7[%c0_19, %c768] : memref<40x2560xf32, #tpu.memory_space<vmem>>, vector<40x256xf32>
    tpu.vector_store %arg7[%c0_19, %c768], %30 {strides = array<i32>} : memref<40x2560xf32, #tpu.memory_space<vmem>>, vector<40x256xf32>,
    %c0_20 = arith.constant 0 : index
    %c2 = arith.constant 2 : index
    %c0_21 = arith.constant 0 : index
    %c0_22 = arith.constant 0 : index
    %32 = vector.load %arg2[%c0_20, %c2, %c0_21, %c0_22] : memref<1x8x4x256xf32, #tpu.memory_space<vmem>>, vector<1x1x4x256xf32>
    %33 = vector.shape_cast %32 : vector<1x1x4x256xf32> to vector<4x256xf32>
    %c17_i32_23 = arith.constant 17 : i32
    %34 = tpu.dynamic_rotate %33 by %c17_i32_23 dim 1 : vector<4x256xf32>, i32 -> vector<4x256xf32>
    %c16_i32_24 = arith.constant 16 : i32
    %35 = tpu.dynamic_rotate %33 by %c16_i32_24 dim 1 : vector<4x256xf32>, i32 -> vector<4x256xf32>
    %c15_i32_25 = arith.constant 15 : i32
    %36 = tpu.dynamic_rotate %33 by %c15_i32_25 dim 1 : vector<4x256xf32>, i32 -> vector<4x256xf32>
    %c1_i32_26 = arith.constant 1 : i32
    %37 = tpu.dynamic_rotate %33 by %c1_i32_26 dim 1 : vector<4x256xf32>, i32 -> vector<4x256xf32>
    %c255_i32_27 = arith.constant 255 : i32
    %38 = tpu.dynamic_rotate %33 by %c255_i32_27 dim 1 : vector<4x256xf32>, i32 -> vector<4x256xf32>
    %c241_i32_28 = arith.constant 241 : i32
    %39 = tpu.dynamic_rotate %33 by %c241_i32_28 dim 1 : vector<4x256xf32>, i32 -> vector<4x256xf32>
    %c240_i32_29 = arith.constant 240 : i32
    %40 = tpu.dynamic_rotate %33 by %c240_i32_29 dim 1 : vector<4x256xf32>, i32 -> vector<4x256xf32>
    %c239_i32_30 = arith.constant 239 : i32
    %41 = tpu.dynamic_rotate %33 by %c239_i32_30 dim 1 : vector<4x256xf32>, i32 -> vector<4x256xf32>
    %cst_31 = arith.constant 0.000000e+00 : f32
    %42 = vector.broadcast %cst_31 : f32 to vector<4x256xf32>
    %43 = tpu.concatenate %34, %35, %36, %37, %33, %38, %39, %40, %41, %42 in 0 : vector<4x256xf32>, vector<4x256xf32>, vector<4x256xf32>, vector<4x256xf32>, vector<4x256xf32>, vector<4x256xf32>, vector<4x256xf32>, vector<4x256xf32>, vector<4x256xf32>, vector<4x256xf32> -> vector<40x256xf32>
    %44 = arith.mulf %43, %3 : vector<40x256xf32>
    %c0_32 = arith.constant 0 : index
    %c1024 = arith.constant 1024 : index
    %45 = vector.load %arg7[%c0_32, %c1024] : memref<40x2560xf32, #tpu.memory_space<vmem>>, vector<40x256xf32>
    tpu.vector_store %arg7[%c0_32, %c1024], %44 {strides = array<i32>} : memref<40x2560xf32, #tpu.memory_space<vmem>>, vector<40x256xf32>,
    %c0_33 = arith.constant 0 : index
    %c3 = arith.constant 3 : index
    %c0_34 = arith.constant 0 : index
    %c0_35 = arith.constant 0 : index
    %46 = vector.load %arg2[%c0_33, %c3, %c0_34, %c0_35] : memref<1x8x4x256xf32, #tpu.memory_space<vmem>>, vector<1x1x4x256xf32>
    %47 = vector.shape_cast %46 : vector<1x1x4x256xf32> to vector<4x256xf32>
    %c17_i32_36 = arith.constant 17 : i32
    %48 = tpu.dynamic_rotate %47 by %c17_i32_36 dim 1 : vector<4x256xf32>, i32 -> vector<4x256xf32>
    %c16_i32_37 = arith.constant 16 : i32
    %49 = tpu.dynamic_rotate %47 by %c16_i32_37 dim 1 : vector<4x256xf32>, i32 -> vector<4x256xf32>
    %c15_i32_38 = arith.constant 15 : i32
    %50 = tpu.dynamic_rotate %47 by %c15_i32_38 dim 1 : vector<4x256xf32>, i32 -> vector<4x256xf32>
    %c1_i32_39 = arith.constant 1 : i32
    %51 = tpu.dynamic_rotate %47 by %c1_i32_39 dim 1 : vector<4x256xf32>, i32 -> vector<4x256xf32>
    %c255_i32_40 = arith.constant 255 : i32
    %52 = tpu.dynamic_rotate %47 by %c255_i32_40 dim 1 : vector<4x256xf32>, i32 -> vector<4x256xf32>
    %c241_i32_41 = arith.constant 241 : i32
    %53 = tpu.dynamic_rotate %47 by %c241_i32_41 dim 1 : vector<4x256xf32>, i32 -> vector<4x256xf32>
    %c240_i32_42 = arith.constant 240 : i32
    %54 = tpu.dynamic_rotate %47 by %c240_i32_42 dim 1 : vector<4x256xf32>, i32 -> vector<4x256xf32>
    %c239_i32_43 = arith.constant 239 : i32
    %55 = tpu.dynamic_rotate %47 by %c239_i32_43 dim 1 : vector<4x256xf32>, i32 -> vector<4x256xf32>
    %cst_44 = arith.constant 0.000000e+00 : f32
    %56 = vector.broadcast %cst_44 : f32 to vector<4x256xf32>
    %57 = tpu.concatenate %48, %49, %50, %51, %47, %52, %53, %54, %55, %56 in 0 : vector<4x256xf32>, vector<4x256xf32>, vector<4x256xf32>, vector<4x256xf32>, vector<4x256xf32>, vector<4x256xf32>, vector<4x256xf32>, vector<4x256xf32>, vector<4x256xf32>, vector<4x256xf32> -> vector<40x256xf32>
    %58 = arith.mulf %57, %3 : vector<40x256xf32>
    %c0_45 = arith.constant 0 : index
    %c1280 = arith.constant 1280 : index
    %59 = vector.load %arg7[%c0_45, %c1280] : memref<40x2560xf32, #tpu.memory_space<vmem>>, vector<40x256xf32>
    tpu.vector_store %arg7[%c0_45, %c1280], %58 {strides = array<i32>} : memref<40x2560xf32, #tpu.memory_space<vmem>>, vector<40x256xf32>,
    %c0_46 = arith.constant 0 : index
    %c4 = arith.constant 4 : index
    %c0_47 = arith.constant 0 : index
    %c0_48 = arith.constant 0 : index
    %60 = vector.load %arg2[%c0_46, %c4, %c0_47, %c0_48] : memref<1x8x4x256xf32, #tpu.memory_space<vmem>>, vector<1x1x4x256xf32>
    %61 = vector.shape_cast %60 : vector<1x1x4x256xf32> to vector<4x256xf32>
    %c17_i32_49 = arith.constant 17 : i32
    %62 = tpu.dynamic_rotate %61 by %c17_i32_49 dim 1 : vector<4x256xf32>, i32 -> vector<4x256xf32>
    %c16_i32_50 = arith.constant 16 : i32
    %63 = tpu.dynamic_rotate %61 by %c16_i32_50 dim 1 : vector<4x256xf32>, i32 -> vector<4x256xf32>
    %c15_i32_51 = arith.constant 15 : i32
    %64 = tpu.dynamic_rotate %61 by %c15_i32_51 dim 1 : vector<4x256xf32>, i32 -> vector<4x256xf32>
    %c1_i32_52 = arith.constant 1 : i32
    %65 = tpu.dynamic_rotate %61 by %c1_i32_52 dim 1 : vector<4x256xf32>, i32 -> vector<4x256xf32>
    %c255_i32_53 = arith.constant 255 : i32
    %66 = tpu.dynamic_rotate %61 by %c255_i32_53 dim 1 : vector<4x256xf32>, i32 -> vector<4x256xf32>
    %c241_i32_54 = arith.constant 241 : i32
    %67 = tpu.dynamic_rotate %61 by %c241_i32_54 dim 1 : vector<4x256xf32>, i32 -> vector<4x256xf32>
    %c240_i32_55 = arith.constant 240 : i32
    %68 = tpu.dynamic_rotate %61 by %c240_i32_55 dim 1 : vector<4x256xf32>, i32 -> vector<4x256xf32>
    %c239_i32_56 = arith.constant 239 : i32
    %69 = tpu.dynamic_rotate %61 by %c239_i32_56 dim 1 : vector<4x256xf32>, i32 -> vector<4x256xf32>
    %cst_57 = arith.constant 0.000000e+00 : f32
    %70 = vector.broadcast %cst_57 : f32 to vector<4x256xf32>
    %71 = tpu.concatenate %62, %63, %64, %65, %61, %66, %67, %68, %69, %70 in 0 : vector<4x256xf32>, vector<4x256xf32>, vector<4x256xf32>, vector<4x256xf32>, vector<4x256xf32>, vector<4x256xf32>, vector<4x256xf32>, vector<4x256xf32>, vector<4x256xf32>, vector<4x256xf32> -> vector<40x256xf32>
    %72 = arith.mulf %71, %3 : vector<40x256xf32>
    %c0_58 = arith.constant 0 : index
    %c1536 = arith.constant 1536 : index
    %73 = vector.load %arg7[%c0_58, %c1536] : memref<40x2560xf32, #tpu.memory_space<vmem>>, vector<40x256xf32>
    tpu.vector_store %arg7[%c0_58, %c1536], %72 {strides = array<i32>} : memref<40x2560xf32, #tpu.memory_space<vmem>>, vector<40x256xf32>,
    %c0_59 = arith.constant 0 : index
    %c5 = arith.constant 5 : index
    %c0_60 = arith.constant 0 : index
    %c0_61 = arith.constant 0 : index
    %74 = vector.load %arg2[%c0_59, %c5, %c0_60, %c0_61] : memref<1x8x4x256xf32, #tpu.memory_space<vmem>>, vector<1x1x4x256xf32>
    %75 = vector.shape_cast %74 : vector<1x1x4x256xf32> to vector<4x256xf32>
    %c17_i32_62 = arith.constant 17 : i32
    %76 = tpu.dynamic_rotate %75 by %c17_i32_62 dim 1 : vector<4x256xf32>, i32 -> vector<4x256xf32>
    %c16_i32_63 = arith.constant 16 : i32
    %77 = tpu.dynamic_rotate %75 by %c16_i32_63 dim 1 : vector<4x256xf32>, i32 -> vector<4x256xf32>
    %c15_i32_64 = arith.constant 15 : i32
    %78 = tpu.dynamic_rotate %75 by %c15_i32_64 dim 1 : vector<4x256xf32>, i32 -> vector<4x256xf32>
    %c1_i32_65 = arith.constant 1 : i32
    %79 = tpu.dynamic_rotate %75 by %c1_i32_65 dim 1 : vector<4x256xf32>, i32 -> vector<4x256xf32>
    %c255_i32_66 = arith.constant 255 : i32
    %80 = tpu.dynamic_rotate %75 by %c255_i32_66 dim 1 : vector<4x256xf32>, i32 -> vector<4x256xf32>
    %c241_i32_67 = arith.constant 241 : i32
    %81 = tpu.dynamic_rotate %75 by %c241_i32_67 dim 1 : vector<4x256xf32>, i32 -> vector<4x256xf32>
    %c240_i32_68 = arith.constant 240 : i32
    %82 = tpu.dynamic_rotate %75 by %c240_i32_68 dim 1 : vector<4x256xf32>, i32 -> vector<4x256xf32>
    %c239_i32_69 = arith.constant 239 : i32
    %83 = tpu.dynamic_rotate %75 by %c239_i32_69 dim 1 : vector<4x256xf32>, i32 -> vector<4x256xf32>
    %cst_70 = arith.constant 0.000000e+00 : f32
    %84 = vector.broadcast %cst_70 : f32 to vector<4x256xf32>
    %85 = tpu.concatenate %76, %77, %78, %79, %75, %80, %81, %82, %83, %84 in 0 : vector<4x256xf32>, vector<4x256xf32>, vector<4x256xf32>, vector<4x256xf32>, vector<4x256xf32>, vector<4x256xf32>, vector<4x256xf32>, vector<4x256xf32>, vector<4x256xf32>, vector<4x256xf32> -> vector<40x256xf32>
    %86 = arith.mulf %85, %3 : vector<40x256xf32>
    %c0_71 = arith.constant 0 : index
    %c1792 = arith.constant 1792 : index
    %87 = vector.load %arg7[%c0_71, %c1792] : memref<40x2560xf32, #tpu.memory_space<vmem>>, vector<40x256xf32>
    tpu.vector_store %arg7[%c0_71, %c1792], %86 {strides = array<i32>} : memref<40x2560xf32, #tpu.memory_space<vmem>>, vector<40x256xf32>,
    %c0_72 = arith.constant 0 : index
    %c6 = arith.constant 6 : index
    %c0_73 = arith.constant 0 : index
    %c0_74 = arith.constant 0 : index
    %88 = vector.load %arg2[%c0_72, %c6, %c0_73, %c0_74] : memref<1x8x4x256xf32, #tpu.memory_space<vmem>>, vector<1x1x4x256xf32>
    %89 = vector.shape_cast %88 : vector<1x1x4x256xf32> to vector<4x256xf32>
    %c17_i32_75 = arith.constant 17 : i32
    %90 = tpu.dynamic_rotate %89 by %c17_i32_75 dim 1 : vector<4x256xf32>, i32 -> vector<4x256xf32>
    %c16_i32_76 = arith.constant 16 : i32
    %91 = tpu.dynamic_rotate %89 by %c16_i32_76 dim 1 : vector<4x256xf32>, i32 -> vector<4x256xf32>
    %c15_i32_77 = arith.constant 15 : i32
    %92 = tpu.dynamic_rotate %89 by %c15_i32_77 dim 1 : vector<4x256xf32>, i32 -> vector<4x256xf32>
    %c1_i32_78 = arith.constant 1 : i32
    %93 = tpu.dynamic_rotate %89 by %c1_i32_78 dim 1 : vector<4x256xf32>, i32 -> vector<4x256xf32>
    %c255_i32_79 = arith.constant 255 : i32
    %94 = tpu.dynamic_rotate %89 by %c255_i32_79 dim 1 : vector<4x256xf32>, i32 -> vector<4x256xf32>
    %c241_i32_80 = arith.constant 241 : i32
    %95 = tpu.dynamic_rotate %89 by %c241_i32_80 dim 1 : vector<4x256xf32>, i32 -> vector<4x256xf32>
    %c240_i32_81 = arith.constant 240 : i32
    %96 = tpu.dynamic_rotate %89 by %c240_i32_81 dim 1 : vector<4x256xf32>, i32 -> vector<4x256xf32>
    %c239_i32_82 = arith.constant 239 : i32
    %97 = tpu.dynamic_rotate %89 by %c239_i32_82 dim 1 : vector<4x256xf32>, i32 -> vector<4x256xf32>
    %cst_83 = arith.constant 0.000000e+00 : f32
    %98 = vector.broadcast %cst_83 : f32 to vector<4x256xf32>
    %99 = tpu.concatenate %90, %91, %92, %93, %89, %94, %95, %96, %97, %98 in 0 : vector<4x256xf32>, vector<4x256xf32>, vector<4x256xf32>, vector<4x256xf32>, vector<4x256xf32>, vector<4x256xf32>, vector<4x256xf32>, vector<4x256xf32>, vector<4x256xf32>, vector<4x256xf32> -> vector<40x256xf32>
    %100 = arith.mulf %99, %3 : vector<40x256xf32>
    %c0_84 = arith.constant 0 : index
    %c2048 = arith.constant 2048 : index
    %101 = vector.load %arg7[%c0_84, %c2048] : memref<40x2560xf32, #tpu.memory_space<vmem>>, vector<40x256xf32>
    tpu.vector_store %arg7[%c0_84, %c2048], %100 {strides = array<i32>} : memref<40x2560xf32, #tpu.memory_space<vmem>>, vector<40x256xf32>,
    %c0_85 = arith.constant 0 : index
    %c7 = arith.constant 7 : index
    %c0_86 = arith.constant 0 : index
    %c0_87 = arith.constant 0 : index
    %102 = vector.load %arg2[%c0_85, %c7, %c0_86, %c0_87] : memref<1x8x4x256xf32, #tpu.memory_space<vmem>>, vector<1x1x4x256xf32>
    %103 = vector.shape_cast %102 : vector<1x1x4x256xf32> to vector<4x256xf32>
    %c17_i32_88 = arith.constant 17 : i32
    %104 = tpu.dynamic_rotate %103 by %c17_i32_88 dim 1 : vector<4x256xf32>, i32 -> vector<4x256xf32>
    %c16_i32_89 = arith.constant 16 : i32
    %105 = tpu.dynamic_rotate %103 by %c16_i32_89 dim 1 : vector<4x256xf32>, i32 -> vector<4x256xf32>
    %c15_i32_90 = arith.constant 15 : i32
    %106 = tpu.dynamic_rotate %103 by %c15_i32_90 dim 1 : vector<4x256xf32>, i32 -> vector<4x256xf32>
    %c1_i32_91 = arith.constant 1 : i32
    %107 = tpu.dynamic_rotate %103 by %c1_i32_91 dim 1 : vector<4x256xf32>, i32 -> vector<4x256xf32>
    %c255_i32_92 = arith.constant 255 : i32
    %108 = tpu.dynamic_rotate %103 by %c255_i32_92 dim 1 : vector<4x256xf32>, i32 -> vector<4x256xf32>
    %c241_i32_93 = arith.constant 241 : i32
    %109 = tpu.dynamic_rotate %103 by %c241_i32_93 dim 1 : vector<4x256xf32>, i32 -> vector<4x256xf32>
    %c240_i32_94 = arith.constant 240 : i32
    %110 = tpu.dynamic_rotate %103 by %c240_i32_94 dim 1 : vector<4x256xf32>, i32 -> vector<4x256xf32>
    %c239_i32_95 = arith.constant 239 : i32
    %111 = tpu.dynamic_rotate %103 by %c239_i32_95 dim 1 : vector<4x256xf32>, i32 -> vector<4x256xf32>
    %cst_96 = arith.constant 0.000000e+00 : f32
    %112 = vector.broadcast %cst_96 : f32 to vector<4x256xf32>
    %113 = tpu.concatenate %104, %105, %106, %107, %103, %108, %109, %110, %111, %112 in 0 : vector<4x256xf32>, vector<4x256xf32>, vector<4x256xf32>, vector<4x256xf32>, vector<4x256xf32>, vector<4x256xf32>, vector<4x256xf32>, vector<4x256xf32>, vector<4x256xf32>, vector<4x256xf32> -> vector<40x256xf32>
    %114 = arith.mulf %113, %3 : vector<40x256xf32>
    %c0_97 = arith.constant 0 : index
    %c2304 = arith.constant 2304 : index
    %115 = vector.load %arg7[%c0_97, %c2304] : memref<40x2560xf32, #tpu.memory_space<vmem>>, vector<40x256xf32>
    tpu.vector_store %arg7[%c0_97, %c2304], %114 {strides = array<i32>} : memref<40x2560xf32, #tpu.memory_space<vmem>>, vector<40x256xf32>,
    %cst_98 = arith.constant 0.000000e+00 : f32
    %116 = vector.broadcast %cst_98 : f32 to vector<8x2048xf32>
    %c0_99 = arith.constant 0 : index
    %c0_100 = arith.constant 0 : index
    %c0_101 = arith.constant 0 : index
    %117 = vector.load %arg3[%c0_99, %c0_100, %c0_101] : memref<3x8x40xf32, #tpu.memory_space<vmem>>, vector<1x8x40xf32>
    %118 = vector.shape_cast %117 : vector<1x8x40xf32> to vector<8x40xf32>
    %c0_102 = arith.constant 0 : index
    %c0_103 = arith.constant 0 : index
    %119 = vector.load %arg7[%c0_102, %c0_103] : memref<40x2560xf32, #tpu.memory_space<vmem>>, vector<40x2048xf32>
    %cst_104 = arith.constant dense<0.000000e+00> : vector<8x2048xf32>
    %120 = tpu.matmul %118, %119, %cst_104 {dimension_numbers = #tpu.dot_dimension_numbers<[1], [0], [0], [1], [0, 0, 1, 1], [], []>} : vector<8x40xf32>, vector<40x2048xf32>, vector<8x2048xf32> -> vector<8x2048xf32>
    %121 = arith.addf %116, %120 : vector<8x2048xf32>
    %c1_105 = arith.constant 1 : index
    %c0_106 = arith.constant 0 : index
    %c0_107 = arith.constant 0 : index
    %122 = vector.load %arg3[%c1_105, %c0_106, %c0_107] : memref<3x8x40xf32, #tpu.memory_space<vmem>>, vector<1x8x40xf32>
    %123 = vector.shape_cast %122 : vector<1x8x40xf32> to vector<8x40xf32>
    %c0_108 = arith.constant 0 : index
    %c256 = arith.constant 256 : index
    %124 = vector.load %arg7[%c0_108, %c256] : memref<40x2560xf32, #tpu.memory_space<vmem>>, vector<40x2048xf32>
    %cst_109 = arith.constant dense<0.000000e+00> : vector<8x2048xf32>
    %125 = tpu.matmul %123, %124, %cst_109 {dimension_numbers = #tpu.dot_dimension_numbers<[1], [0], [0], [1], [0, 0, 1, 1], [], []>} : vector<8x40xf32>, vector<40x2048xf32>, vector<8x2048xf32> -> vector<8x2048xf32>
    %126 = arith.addf %121, %125 : vector<8x2048xf32>
    %c2_110 = arith.constant 2 : index
    %c0_111 = arith.constant 0 : index
    %c0_112 = arith.constant 0 : index
    %127 = vector.load %arg3[%c2_110, %c0_111, %c0_112] : memref<3x8x40xf32, #tpu.memory_space<vmem>>, vector<1x8x40xf32>
    %128 = vector.shape_cast %127 : vector<1x8x40xf32> to vector<8x40xf32>
    %c0_113 = arith.constant 0 : index
    %c512_114 = arith.constant 512 : index
    %129 = vector.load %arg7[%c0_113, %c512_114] : memref<40x2560xf32, #tpu.memory_space<vmem>>, vector<40x2048xf32>
    %cst_115 = arith.constant dense<0.000000e+00> : vector<8x2048xf32>
    %130 = tpu.matmul %128, %129, %cst_115 {dimension_numbers = #tpu.dot_dimension_numbers<[1], [0], [0], [1], [0, 0, 1, 1], [], []>} : vector<8x40xf32>, vector<40x2048xf32>, vector<8x2048xf32> -> vector<8x2048xf32>
    %131 = arith.addf %126, %130 : vector<8x2048xf32>
    %c0_116 = arith.constant 0 : index
    %c0_117 = arith.constant 0 : index
    %132 = vector.load %arg4[%c0_116, %c0_117] : memref<8x1xf32, #tpu.memory_space<vmem>>, vector<8x1xf32>
    %133 = vector.broadcast %132 : vector<8x1xf32> to vector<8x2048xf32>
    %134 = arith.addf %131, %133 : vector<8x2048xf32>
    %c0_118 = arith.constant 0 : index
    %c0_119 = arith.constant 0 : index
    %c0_120 = arith.constant 0 : index
    %135 = vector.load %arg6[%c0_118, %c0_119, %c0_120] : memref<1x8x2048xf32, #tpu.memory_space<vmem>>, vector<1x8x2048xf32>
    %136 = vector.shape_cast %135 : vector<1x8x2048xf32> to vector<8x2048xf32>
    %137 = vector.shape_cast %134 : vector<8x2048xf32> to vector<1x8x2048xf32>
    tpu.vector_store %arg6[%c0_118, %c0_119, %c0_120], %137 {strides = array<i32>} : memref<1x8x2048xf32, #tpu.memory_space<vmem>>, vector<1x8x2048xf32>,
    %c1_i32_121 = arith.constant 1 : i32
    %138 = arith.addi %arg1, %c1_i32_121 : i32
    %c1_i32_122 = arith.constant 1 : i32
    %139 = arith.cmpi slt, %138, %c1_i32_122 : i32
    %140 = arith.extui %139 : i1 to i32
    %c0_i32_123 = arith.constant 0 : i32
    %141 = arith.cmpi ne, %140, %c0_i32_123 : i32
    scf.if %141 {
      %c0_124 = arith.constant 0 : index
      %c2048_125 = arith.constant 2048 : index
      %142 = vector.load %arg7[%c0_124, %c2048_125] : memref<40x2560xf32, #tpu.memory_space<vmem>>, vector<40x512xf32>
      %c0_126 = arith.constant 0 : index
      %c0_127 = arith.constant 0 : index
      %143 = vector.load %arg7[%c0_126, %c0_127] : memref<40x2560xf32, #tpu.memory_space<vmem>>, vector<40x512xf32>
      tpu.vector_store %arg7[%c0_126, %c0_127], %142 {strides = array<i32>} : memref<40x2560xf32, #tpu.memory_space<vmem>>, vector<40x512xf32>,
    } else {
    }
    return
  }
  func.func @transform_0(%arg0: i32, %arg1: i32) -> (i32, i32, i32, i32) {
    %c0_i32 = arith.constant 0 : i32
    %c0_i32_0 = arith.constant 0 : i32
    %c0_i32_1 = arith.constant 0 : i32
    return %arg0, %arg1, %c0_i32, %c0_i32_0 : i32, i32, i32, i32
  }
  func.func @transform_1(%arg0: i32, %arg1: i32) -> (i32, i32, i32) {
    %c0_i32 = arith.constant 0 : i32
    %c0_i32_0 = arith.constant 0 : i32
    %c0_i32_1 = arith.constant 0 : i32
    %c0_i32_2 = arith.constant 0 : i32
    return %c0_i32, %c0_i32_0, %c0_i32_1 : i32, i32, i32
  }
  func.func @transform_2(%arg0: i32, %arg1: i32) -> (i32, i32) {
    %c0_i32 = arith.constant 0 : i32
    %c0_i32_0 = arith.constant 0 : i32
    %c0_i32_1 = arith.constant 0 : i32
    return %c0_i32, %c0_i32_0 : i32, i32
  }
  func.func @transform_3(%arg0: i32, %arg1: i32) -> (i32, i32) {
    %c0_i32 = arith.constant 0 : i32
    %c0_i32_0 = arith.constant 0 : i32
    %c0_i32_1 = arith.constant 0 : i32
    return %c0_i32, %c0_i32_0 : i32, i32
  }
  func.func @transform_4(%arg0: i32, %arg1: i32) -> (i32, i32, i32) {
    %c0_i32 = arith.constant 0 : i32
    %c0_i32_0 = arith.constant 0 : i32
    return %arg0, %c0_i32, %arg1 : i32, i32, i32
  }
}

</mosaic_0001>

<bundles_post_ra>
// kernel: tpu_custom_call.1
= control target key start
LH: loop header
LB: loop body
LE: loop exit
PB: predicated region body
PF: predicated region fallthrough
CT: control target
= control target key end

     0   :  { %9 = vsyncpa [#allocation4], 0  ;;  %s5230_s0 = inlined_call_operand.hbm [shape: f32[2,8,4,256], index: 0, kind: input, shape index: {}]   ;;  %s5231_s1 = inlined_call_operand.hbm [shape: f32[3,8,40], index: 1, kind: input, shape index: {}]   ;;  %s5232_s2 = inlined_call_operand.vmem [shape: f32[8,1], index: 2, kind: input, shape index: {}]   ;;  %s5233_s3 = inlined_call_operand.hbm [shape: f32[40,256], index: 3, kind: input, shape index: {}]   ;;  %s5234_s4 = inlined_call_operand.hbm [shape: f32[2,8,2048], index: 4, kind: output, shape index: {}]  }
   0x1   :  { %11 = vsyncpa [#allocation4 + $0x1], 0 }
   0x2   :  { %12 = vsyncpa [#allocation7], 0 }
   0x3   :  { %13 = vsyncpa [#allocation5], 0 }
   0x4   :  { %15 = vsyncpa [#allocation5 + $0x1], 0  ;;  %s3877_s15 = smov 0   ;;  %s3879_s16 = smov 0  }
   0x5   :  { %s3881_s17 = smov 0   ;;  %s3883_s18 = smov 0  }
   0x6   :  { %s3885_s19 = smov 0   ;;  %s3887_s20 = smov 0  }
   0x7 LB: > { %s3274_s21 = sadd.s32 4294967295, %s3831_s20   ;;  %s3275_s22 = sadd.s32 4294967294, %s3831_s20   ;;  %s3831_s20 = sphi %s3887_s20, %s21_s20   ;;  %s3827_s19 = sphi %s3885_s19, %s5276_s19   ;;  %s3823_s18 = sphi %s3883_s18, %s5275_s18   ;;  %s3819_s17 = sphi %s3881_s17, %s5274_s17   ;;  %s3815_s16 = sphi %s3879_s16, %s5273_s16   ;;  %s3811_s15 = sphi %s3877_s15, %s5272_s15  }
   0x8   : > { %p55_p0 = scmp.ne.s32.totalorder %s3815_s16, %s3811_s15  ;;  %p3911_p1 = scmp.eq.s32.totalorder %s3274_s21, 0 }
   0x9   : > { %p3915_p2 = scmp.eq.s32.totalorder %s3274_s21, 1  ;;  %p150_p3 = scmp.eq.s32.totalorder %s3275_s22, 1 }
   0xa   : > { %s5248_s23 = scalar_select %p3911_p1, 1, 0 }
   0xb   : > { %p3921_p4 = por %p3911_p1, %p55_p0  ;;  %p3276_p5 = scmp.ge.s32.totalorder %s3831_s20, 1 }
   0xc   : > { %p3926_p6 = por %p150_p3, %p55_p0  ;;  %p157_p7 = scmp.lt.s32.totalorder %s3831_s20, 3 }
   0xd   : > { %s5250_s25 = scalar_select %p3921_p4, 1, 0 }
   0xe   : > { %s5251_s26 = scalar_select %p3926_p6, 1, 0 }
   0xf   : > { %p3931_p8 = pnand %p3276_p5, %p157_p7  ;;  %s3833_s28 = smov [#allocation6]  }
  0x10   : > { %s169_s29 = sshll.u32 %s3833_s28, 4  ;;  %s3834_s5 = smov [#allocation8]   ;;  %s3935_s29 = int_to_ptr.vmem [resolvable:$true] %s169_s29 }
  0x11   : > { %p3553_p9 = pneg %p3931_p8  ;;  %s185_s6 = sshll.u32 %s3834_s5, 4  ;;  %s3946_s6 = int_to_ptr.vmem [resolvable:$true] %s185_s6 }
  0x12   : > { %s3659_s9 = scalar_lea.hbm %s5231_s1, 384 }
  0x13   : > { %p3942_p11 = pnand %p3553_p9, %p3911_p1  ;;  %p3660_p12 = scmp.ne.s32.totalorder %s5231_s1, %s3659_s9 }
  0x14   : > { %p3666_p5 = scmp.lt.u32.totalorder %s3659_s9, %s5231_s1 }
  0x15   : > { %p3661_p13 = pneg %p3942_p11 }
  0x17   : > { %p3662_p0 = pnand %p3661_p13, %p3660_p12 }
  0x19   : > { %p3663_p3 = pneg %p3662_p0 }
  0x1b   : > { %p3668_p7 = pnand %p3666_p5, %p3663_p3 }
  0x1d   : > { %3671 = shalt.err (!%p3668_p7)
}
  0x1e   : > { %s3672_s14 = scalar_lea.vmem %s3935_s29, 384  ;;  %p3680_p1 = scmp.lt.s32.totalorder %s3935_s29, %s3935_s29 }
  0x1f   : > { %p3673_p9 = scmp.ne.s32.totalorder %s3935_s29, %s3672_s14  ;;  %p3681_p12 = scmp.lt.s32.totalorder %s3672_s14, %s3672_s14 }
  0x21   : > { %p3675_p10 = pnand %p3673_p9, %p3661_p13  ;;  %p3682_p0 = por %p3681_p12, %p3680_p1 }
  0x23   : > { %p3676_p6 = pneg %p3675_p10 }
  0x25   : > { %p3683_p4 = pnand %p3682_p0, %p3676_p6 }
  0x27   : > { %3686 = shalt.err (!%p3683_p4)
}
  0x28   : > { %s3835_s21 = smov 128   ;;  %s3836_s22 = smov 8  }
  0x29   : > { %3556 = dma.hbm_to_vmem [thread:$0]  (!%p3942_p11), %s5231_s1, 384, %s3935_s29, [#allocation7], %s3835_s21, %s3835_s21, %s3836_s22  }
  0x2a   : > { %s3687_s9 = scalar_lea.hbm %s5233_s3, 1280 }
  0x2b   : > { %p3688_p1 = scmp.ne.s32.totalorder %s5233_s3, %s3687_s9  ;;  %p3694_p10 = scmp.lt.u32.totalorder %s3687_s9, %s5233_s3 }
  0x2d   : > { %p3690_p4 = pnand %p3688_p1, %p3661_p13 }
  0x2f   : > { %p3691_p6 = pneg %p3690_p4 }
  0x31   : > { %p3696_p3 = pnand %p3694_p10, %p3691_p6 }
  0x33   : > { %3699 = shalt.err (!%p3696_p3)
}
  0x34   : > { %s3700_s29 = scalar_lea.vmem %s3946_s6, 1280  ;;  %p3708_p12 = scmp.lt.s32.totalorder %s3946_s6, %s3946_s6 }
  0x35   : > { %p3701_p5 = scmp.ne.s32.totalorder %s3946_s6, %s3700_s29  ;;  %p3709_p0 = scmp.lt.s32.totalorder %s3700_s29, %s3700_s29 }
  0x37   : > { %p3703_p7 = pnand %p3701_p5, %p3661_p13  ;;  %p3710_p1 = por %p3709_p0, %p3708_p12 }
  0x39   : > { %p3704_p9 = pneg %p3703_p7 }
  0x3b   : > { %p3711_p4 = pnand %p3710_p1, %p3704_p9 }
  0x3d   : > { %3714 = shalt.err (!%p3711_p4)
}
  0x3e   : > { %s3837_s14 = smov 256   ;;  %s3838_s28 = smov 16  }
  0x3f   : > { %3559 = dma.hbm_to_vmem [thread:$0]  (!%p3942_p11), %s5233_s3, 1280, %s3946_s6, [#allocation7], %s3837_s14, %s3837_s14, %s3838_s28  }
  0x40   : > { %s33_s8 = sadd.s32 1, %s3827_s19  ;;  %s42_s9 = sadd.s32 1, %s3819_s17 }
  0x41   : > { %p35_p13 = scmp.ge.s32.totalorder %s33_s8, 2  ;;  %p49_p6 = scmp.ne.s32.totalorder %s3819_s17, %s3815_s16 }
  0x42   : > { %p50_p10 = scmp.eq.s32.totalorder %s3831_s20, 0  ;;  %p3570_p3 = scmp.lt.s32.totalorder %s3831_s20, 2 }
  0x43   : > { %s5278_s8 = smov (%p35_p13, %s33_s8), 0  ;;  %p4013_p7 = por %p3915_p2, %p49_p6 }
  0x44   : > { %p51_p5 = por %p50_p10, %p49_p6  ;;  %s37_s30 = ssub.s32 %s3827_s19, %s5278_s8 }
  0x45   : > { %s5254_s10 = scalar_select %p4013_p7, 1, 0 }
  0x46   : > { %s199_s11 = sand.u32 1, %s3819_s17   ;;  %p40_p9 = scmp.eq.s32.totalorder %s37_s30, 0 }
  0x47   : > { %s3280_s6 = sshll.u32 %s199_s11, 6  ;;  %s3324_s12 = sshll.u32 %s3827_s19, 10 }
  0x48   : > { %s4022_s13 = scalar_select %p40_p9, %s3819_s17, %s42_s9  }
  0x49   : > { %s4027_s28 = scalar_lea.hbm %s5230_s0, %s3324_s12  ;;  %s203_s24 = scalar_lea.vmem [#allocation3], %s3280_s6 }
  0x4a   : > { %s213_s5 = sshll.u32 %s203_s24, 4  ;;  %p4031_p2 = pnand %p3570_p3, %p51_p5  ;;  %s4035_s5 = int_to_ptr.vmem [resolvable:$true] %s213_s5 }
  0x4b   : > { %s4037_s9 = scalar_lea.sflag [#allocation4], %s199_s11  ;;  %s3715_s30 = scalar_lea.hbm %s4027_s28, 1024 }
  0x4c   : > { %p3716_p11 = scmp.ne.s32.totalorder %s4027_s28, %s3715_s30  ;;  %p3717_p12 = pneg %p4031_p2 }
  0x4d   : > { %s3720_s29 = scalar_lea.hbm %s5230_s0, 2048  ;;  %p3721_p4 = scmp.lt.u32.totalorder %s4027_s28, %s5230_s0 }
  0x4e   : > { %p3718_p0 = pnand %p3717_p12, %p3716_p11  ;;  %p3722_p13 = scmp.lt.u32.totalorder %s3720_s29, %s3715_s30 }
  0x4f   : > { %p3724_p10 = scmp.lt.u32.totalorder %s3715_s30, %s4027_s28 }
  0x50   : > { %p3719_p1 = pneg %p3718_p0  ;;  %p3723_p6 = por %p3722_p13, %p3721_p4 }
  0x52   : > { %p3725_p3 = por %p3724_p10, %p3723_p6 }
  0x54   : > { %p3726_p5 = pnand %p3725_p3, %p3719_p1 }
  0x56   : > { %3729 = shalt.err (!%p3726_p5)
}
  0x57   : > { %s3730_s11 = scalar_lea.vmem %s4035_s5, 1024  ;;  %s3839_s6 = smov [#allocation3]  }
  0x58   : > { %p3731_p9 = scmp.ne.s32.totalorder %s4035_s5, %s3730_s11  ;;  %s3735_s12 = sshll.u32 %s3839_s6, 4  ;;  %s3736_s12 = int_to_ptr.vmem [resolvable:$false] %s3735_s12 }
  0x59   : > { %s3737_s14 = scalar_lea.vmem %s3736_s12, 2048  ;;  %p3738_p7 = scmp.lt.s32.totalorder %s4035_s5, %s3736_s12 }
  0x5a   : > { %p3733_p11 = pnand %p3731_p9, %p3717_p12  ;;  %p3739_p4 = scmp.lt.s32.totalorder %s3737_s14, %s3730_s11 }
  0x5c   : > { %p3734_p0 = pneg %p3733_p11  ;;  %p3740_p13 = por %p3739_p4, %p3738_p7 }
  0x5e   : > { %p3741_p6 = pnand %p3740_p13, %p3734_p0 }
  0x60   : > { %3744 = shalt.err (!%p3741_p6)
}
  0x61   : > { %3563 = dma.hbm_to_vmem [thread:$0]  (!%p4031_p2), %s4027_s28, 1024, %s4035_s5, %s4037_s9, %s3835_s21, %s3835_s21, %s3836_s22  }
  0x62   : > { %225 = sbr.rel (%p3931_p8) target bundleno = 756 (0x2f4), region = 36 }
  0x69   : > { %s4071_s30 = sand.u32 1, %s3815_s16   ;;  %p5256_p7 = scmp.ne.s32.totalorder %s5250_s25, 0 }
  0x6a   : > { %s3284_s29 = sshll.u32 %s4071_s30, 6  ;;  %s228_s24 = scalar_lea.sflag [#allocation4], %s4071_s30 }
  0x6b   : > { %s4075_s11 = scalar_lea.vmem [#allocation3], %s3284_s29 }
  0x6c   : > { %3798 = dma.done.wait (%p5256_p7), %s228_s24, 1024  }
  0x6d   : > { %3800 = vsyncadd (%p5256_p7), %s228_s24, 4294966272  ;;  %p5257_p2 = scmp.ne.s32.totalorder %s5248_s23, 0 }
  0x6f   : > { %3802 = dma.done.wait (%p5257_p2), [#allocation7], 1664  }
  0x70   : > { %3804 = vsyncadd (%p5257_p2), [#allocation7], 4294965632  ;;  %v4086_v0 = vld [vmem:[%s4075_s11] sm:$0xff]  ;;  %s3840_s27 = smov 1   ;;  %s3841_s21 = smov 16   ;;  %v4105_v2 = vld [vmem:[%s4075_s11 + $0x8] sm:$0xff]  ;;  %v308_v10 = vlaneseq }
  0x71   : > { %327 = vrot.lane.b32.xlu1 %v4086_v0, %s3840_s27  ;;  %313 = vrot.lane.b32.xlu0 %v4086_v0, %s3841_s21  ;;  %v4094_v1 = vcombine.high %v4086_v0, %v4086_v0  ;;  %s3842_s25 = smov 17   ;;  %s3843_s23 = smov 15   ;;  %v4113_v3 = vcombine.high %v4105_v2, %v4105_v2  ;;  %v5239_v4 = vmov 0.0   ;;  %vm3847_vm0 = vmmov 0   ;;  %v4136_v5 = vld [vmem:[#allocation6 + $0x8] sm:$0xff]  ;;  %v4162_v6 = vld [vmem:[%s4075_s11 + $0x10] sm:$0xff] }
  0x72   : > { %s3844_s22 = smov 127   ;;  %3332 = vmatprep.subr.mxu0 %v5239_v4  ;;  %1398 = vmatprep.mubr.f32.mxu1 %v5239_v4  ;;  %s3846_s28 = smov 112   ;;  %vm1259_vm1 = vcmask 326656   ;;  %v4170_v7 = vcombine.high %v4162_v6, %v4162_v6  ;;  %v4189_v8 = vld [vmem:[%s4075_s11 + $0x18] sm:$0xff]  ;;  %v4240_v11 = vld [vmem:[%s4075_s11 + $0x20] sm:$0xff]  ;;  %v4246_v14 = vand.u32 127, %v308_v10 }
  0x73   : > { %3333 = vmatpush3.msra.mxu0 %v5239_v4  ;;  %3334 = vmatprep.mubr.msk.f32.mxu0 %vm3847_vm0, %v5239_v4  ;;  %s3848_s5 = smov 113   ;;  %s3849_s7 = smov 111   ;;  %v4197_v9 = vcombine.high %v4189_v8, %v4189_v8  ;;  %v4250_v15 = vcombine.high %v4240_v11, %v4240_v11  ;;  %vm386_vm5 = vcmask 1043456   ;;  %v4276_v28 = vld [vmem:[#allocation8 + $0x8] sm:$0xff]  ;;  %v4278_v33 = vld [vmem:[#allocation8 + $0x18] sm:$0xff]  ;;  %v4281_v35 = vld [vmem:[#allocation8] sm:$0xff] }
  0x74   : > { %3335 = vmatmul.mubr.msk.f32.vlgmr.msra.gmra.mrb[0].mxu0 %vm1259_vm1, %v4136_v5  ;;  %vm331_vm2 = vcmp.lt.s32.totalorder %v4246_v14, 1  ;;  %vm317_vm3 = vcmp.lt.s32.totalorder %v4246_v14, 16  ;;  %vm310_vm4 = vcmp.lt.s32.totalorder %v4246_v14, 17  ;;  %vm324_vm6 = vcmp.lt.s32.totalorder %v4246_v14, 15  ;;  %v4283_v36 = vld [vmem:[#allocation8 + $0x10] sm:$0xff]  ;;  %s3287_s12 = sshll.u32 %s4071_s30, 7 }
  0x75   : > { %304 = vrot.lane.b32.xlu0 %v4086_v0, %s3842_s25  ;;  %329 = vrot.lane.b32.xlu1 %v4094_v1, %s3840_s27  ;;  %v4310_v50 = vld [vmem:[%s4075_s11 + $0x28] sm:$0xff]  ;;  %vm338_vm7 = vcmp.lt.s32.totalorder %v4246_v14, 127  ;;  %vm352_vm8 = vcmp.lt.s32.totalorder %v4246_v14, 112  ;;  %vm345_vm9 = vcmp.lt.s32.totalorder %v4246_v14, 113  ;;  %vm359_vm10 = vcmp.lt.s32.totalorder %v4246_v14, 111  ;;  %s5157_s14 = scalar_lea.vmem [#allocation9], %s3287_s12 }
  0x76   : > { %1469 = vmatprep.mubr.f32.mxu0 %v5239_v4  ;;  %v4319_v53 = vcombine.high %v4310_v50, %v4310_v50  ;;  %s3325_s29 = sshll.u32 %s3823_s18, 11  ;;  %s3171_s24 = sshll.u32 %s5157_s14, 4  ;;  %s5181_s24 = int_to_ptr.vmem [resolvable:$true] %s3171_s24 }
  0x77   : > { %s3155_s18 = scalar_lea.sflag [#allocation5], %s4071_s30  ;;  %p5269_p12 = scmp.ne.s32.totalorder %s5254_s10, 0 }
  0x79   : > { %306 = vrot.lane.b32.xlu1 %v4094_v1, %s3842_s25  ;;  %315 = vrot.lane.b32.xlu0 %v4094_v1, %s3841_s21 }
  0x7d   : > { %322 = vrot.lane.b32.xlu1 %v4094_v1, %s3843_s23  ;;  %320 = vrot.lane.b32.xlu0 %v4086_v0, %s3843_s23 }
  0x81   : > { %430 = vrot.lane.b32.xlu1 %v4113_v3, %s3841_s21  ;;  %428 = vrot.lane.b32.xlu0 %v4105_v2, %s3841_s21 }
  0x85   : > { %442 = vrot.lane.b32.xlu1 %v4113_v3, %s3840_s27  ;;  %440 = vrot.lane.b32.xlu0 %v4105_v2, %s3840_s27 }
  0x89   : > { %336 = vrot.lane.b32.xlu1 %v4094_v1, %s3844_s22  ;;  %334 = vrot.lane.b32.xlu0 %v4086_v0, %s3844_s22 }
  0x8d   : > { %350 = vrot.lane.b32.xlu1 %v4094_v1, %s3846_s28  ;;  %348 = vrot.lane.b32.xlu0 %v4086_v0, %s3846_s28 }
  0x91   : > { %424 = vrot.lane.b32.xlu1 %v4113_v3, %s3842_s25  ;;  %422 = vrot.lane.b32.xlu0 %v4105_v2, %s3842_s25 }
  0x95   : > { %436 = vrot.lane.b32.xlu1 %v4113_v3, %s3843_s23  ;;  %434 = vrot.lane.b32.xlu0 %v4105_v2, %s3843_s23 }
  0x99   : > { %343 = vrot.lane.b32.xlu1 %v4094_v1, %s3848_s5  ;;  %341 = vrot.lane.b32.xlu0 %v4086_v0, %s3848_s5 }
  0x9d   : > { %448 = vrot.lane.b32.xlu1 %v4113_v3, %s3844_s22  ;;  %446 = vrot.lane.b32.xlu0 %v4105_v2, %s3844_s22 }
  0xa1   : > { %460 = vrot.lane.b32.xlu1 %v4113_v3, %s3846_s28  ;;  %458 = vrot.lane.b32.xlu0 %v4105_v2, %s3846_s28 }
  0xa5   : > { %454 = vrot.lane.b32.xlu1 %v4113_v3, %s3848_s5  ;;  %452 = vrot.lane.b32.xlu0 %v4105_v2, %s3848_s5 }
  0xa9   : > { %537 = vrot.lane.b32.xlu1 %v4170_v7, %s3841_s21  ;;  %535 = vrot.lane.b32.xlu0 %v4162_v6, %s3841_s21 }
  0xad   : > { %549 = vrot.lane.b32.xlu1 %v4170_v7, %s3840_s27  ;;  %547 = vrot.lane.b32.xlu0 %v4162_v6, %s3840_s27 }
  0xb1   : > { %357 = vrot.lane.b32.xlu1 %v4094_v1, %s3849_s7  ;;  %355 = vrot.lane.b32.xlu0 %v4086_v0, %s3849_s7 }
  0xb5   : > { %531 = vrot.lane.b32.xlu1 %v4170_v7, %s3842_s25  ;;  %529 = vrot.lane.b32.xlu0 %v4162_v6, %s3842_s25 }
  0xb9   : > { %543 = vrot.lane.b32.xlu1 %v4170_v7, %s3843_s23  ;;  %541 = vrot.lane.b32.xlu0 %v4162_v6, %s3843_s23 }
  0xbd   : > { %644 = vrot.lane.b32.xlu1 %v4197_v9, %s3841_s21  ;;  %642 = vrot.lane.b32.xlu0 %v4189_v8, %s3841_s21 }
  0xc1   : > { %656 = vrot.lane.b32.xlu1 %v4197_v9, %s3840_s27  ;;  %654 = vrot.lane.b32.xlu0 %v4189_v8, %s3840_s27 }
  0xc5   : > { %555 = vrot.lane.b32.xlu1 %v4170_v7, %s3844_s22  ;;  %553 = vrot.lane.b32.xlu0 %v4162_v6, %s3844_s22 }
  0xc9   : > { %567 = vrot.lane.b32.xlu1 %v4170_v7, %s3846_s28  ;;  %565 = vrot.lane.b32.xlu0 %v4162_v6, %s3846_s28 }
  0xcd   : > { %466 = vrot.lane.b32.xlu1 %v4113_v3, %s3849_s7  ;;  %464 = vrot.lane.b32.xlu0 %v4105_v2, %s3849_s7 }
  0xd1   : > { %638 = vrot.lane.b32.xlu1 %v4197_v9, %s3842_s25  ;;  %636 = vrot.lane.b32.xlu0 %v4189_v8, %s3842_s25 }
  0xd5   : > { %650 = vrot.lane.b32.xlu1 %v4197_v9, %s3843_s23  ;;  %648 = vrot.lane.b32.xlu0 %v4189_v8, %s3843_s23 }
  0xd9   : > { %561 = vrot.lane.b32.xlu1 %v4170_v7, %s3848_s5  ;;  %559 = vrot.lane.b32.xlu0 %v4162_v6, %s3848_s5 }
  0xdd   : > { %662 = vrot.lane.b32.xlu1 %v4197_v9, %s3844_s22  ;;  %660 = vrot.lane.b32.xlu0 %v4189_v8, %s3844_s22 }
  0xe1   : > { %674 = vrot.lane.b32.xlu1 %v4197_v9, %s3846_s28  ;;  %672 = vrot.lane.b32.xlu0 %v4189_v8, %s3846_s28 }
  0xe3   : > { %v328_v12 = vpop.permute.xlu1 %327  ;;  %v314_v13 = vpop.permute.xlu0 %313 }
  0xe5   : > { %668 = vrot.lane.b32.xlu1 %v4197_v9, %s3848_s5  ;;  %666 = vrot.lane.b32.xlu0 %v4189_v8, %s3848_s5 }
  0xe7   : > { %v305_v16 = vpop.permute.xlu0 %304  ;;  %v330_v17 = vpop.permute.xlu1 %329 }
  0xe8   : > { %v332_v20 = vsel %vm331_vm2, %v328_v12, %v330_v17  ;;  %v333_v21 = vsel %vm331_vm2, %v330_v17, %v328_v12 }
  0xe9   : > { %751 = vrot.lane.b32.xlu1 %v4250_v15, %s3841_s21  ;;  %749 = vrot.lane.b32.xlu0 %v4240_v11, %s3841_s21  ;;  %v370_v29 = vrot.slane %v333_v21, 4  ;;  %v371_v30 = vrot.slane %v332_v20, 4 }
  0xeb   : > { %v307_v18 = vpop.permute.xlu1 %306  ;;  %v316_v19 = vpop.permute.xlu0 %315 }
  0xec   : > { %v318_v22 = vsel %vm317_vm3, %v314_v13, %v316_v19  ;;  %v319_v23 = vsel %vm317_vm3, %v316_v19, %v314_v13  ;;  %v311_v26 = vsel %vm310_vm4, %v305_v16, %v307_v18  ;;  %v312_v27 = vsel %vm310_vm4, %v307_v18, %v305_v16 }
  0xed   : > { %v364_v24 = vrot.slane %v319_v23, 4  ;;  %v365_v25 = vrot.slane %v318_v22, 4  ;;  %763 = vrot.lane.b32.xlu1 %v4250_v15, %s3840_s27  ;;  %761 = vrot.lane.b32.xlu0 %v4240_v11, %s3840_s27 }
  0xef   : > { %v323_v31 = vpop.permute.xlu1 %322  ;;  %v321_v32 = vpop.permute.xlu0 %320  ;;  %v388_v34 = vsel %vm386_vm5, %v311_v26, %v365_v25  ;;  %v387_v37 = vsel %vm386_vm5, %v312_v27, %v364_v24 }
  0xf0   : > { %v325_v38 = vsel %vm324_vm6, %v321_v32, %v323_v31  ;;  %v326_v39 = vsel %vm324_vm6, %v323_v31, %v321_v32  ;;  %v398_v42 = vmul.f32 %v388_v34, %v4276_v28  ;;  %v397_v44 = vmul.f32 %v387_v37, %v4281_v35 }
  0xf1   : > { %v389_v40 = vsel %vm386_vm5, %v326_v39, %v370_v29  ;;  %v390_v41 = vsel %vm386_vm5, %v325_v38, %v371_v30  ;;  %573 = vrot.lane.b32.xlu1 %v4170_v7, %s3849_s7  ;;  %571 = vrot.lane.b32.xlu0 %v4162_v6, %s3849_s7 }
  0xf2   : > { %v400_v43 = vmul.f32 %v390_v41, %v4278_v33  ;;  %v399_v45 = vmul.f32 %v389_v40, %v4283_v36  ;;  %v4372_v41 = vld [vmem:[#allocation8 + $0x20] sm:$0xff] }
  0xf3   : > { %v431_v46 = vpop.permute.xlu1 %430  ;;  %v429_v47 = vpop.permute.xlu0 %428 }
  0xf4   : > { %v4300_v48 = vpack.c.bf16 %v400_v43, %v398_v42  ;;  %v4302_v49 = vpack.c.bf16 %v399_v45, %v397_v44  ;;  %v432_v58 = vsel %vm317_vm3, %v429_v47, %v431_v46  ;;  %v433_v59 = vsel %vm317_vm3, %v431_v46, %v429_v47  ;;  %v4374_v46 = vld [vmem:[#allocation8 + $0x28] sm:$0xff]  ;;  %v4376_v47 = vld [vmem:[#allocation8 + $0x38] sm:$0xff] }
  0xf5   : > { %745 = vrot.lane.b32.xlu1 %v4250_v15, %s3842_s25  ;;  %743 = vrot.lane.b32.xlu0 %v4240_v11, %s3842_s25  ;;  %v472_v17 = vrot.slane %v433_v59, 4  ;;  %v473_v18 = vrot.slane %v432_v58, 4 }
  0xf6   : > { %3348 = vmatprep.subr.bf16.mxu1 %v4300_v48 }
  0xf7   : > { %v443_v51 = vpop.permute.xlu1 %442  ;;  %v441_v52 = vpop.permute.xlu0 %440  ;;  %3350 = vmatpush1.bf16.msra.mxu1 %v4302_v49 }
  0xf8   : > { %v444_v60 = vsel %vm331_vm2, %v441_v52, %v443_v51  ;;  %v445_v61 = vsel %vm331_vm2, %v443_v51, %v441_v52  ;;  %v4380_v52 = vld [vmem:[#allocation8 + $0x30] sm:$0xff] }
  0xf9   : > { %757 = vrot.lane.b32.xlu1 %v4250_v15, %s3843_s23  ;;  %755 = vrot.lane.b32.xlu0 %v4240_v11, %s3843_s23  ;;  %v478_v19 = vrot.slane %v445_v61, 4  ;;  %v479_v20 = vrot.slane %v444_v60, 4 }
  0xfb   : > { %v337_v54 = vpop.permute.xlu1 %336  ;;  %v335_v55 = vpop.permute.xlu0 %334 }
  0xfc   : > { %v339_v10 = vsel %vm338_vm7, %v335_v55, %v337_v54  ;;  %v340_v12 = vsel %vm338_vm7, %v337_v54, %v335_v55 }
  0xfd   : > { %858 = vrot.lane.b32.xlu1 %v4319_v53, %s3841_s21  ;;  %856 = vrot.lane.b32.xlu0 %v4310_v50, %s3841_s21  ;;  %v376_v21 = vrot.slane %v339_v10, 4  ;;  %v377_v22 = vrot.slane %v340_v12, 4 }
  0xff   : > { %v351_v56 = vpop.permute.xlu1 %350  ;;  %v349_v57 = vpop.permute.xlu0 %348  ;;  %v392_v51 = vsel %vm386_vm5, %v4094_v1, %v377_v22  ;;  %v391_v54 = vsel %vm386_vm5, %v4086_v0, %v376_v21 }
 0x100   : > { %v353_v27 = vsel %vm352_vm8, %v349_v57, %v351_v56  ;;  %v354_v29 = vsel %vm352_vm8, %v351_v56, %v349_v57  ;;  %v402_v0 = vmul.f32 %v392_v51, %v4374_v46  ;;  %v401_v61 = vmul.f32 %v391_v54, %v4372_v41  ;;  %v4460_v54 = vld [vmem:[%s4075_s11 + $0x30] sm:$0xff] }
 0x101   : > { %870 = vrot.lane.b32.xlu1 %v4319_v53, %s3840_s27  ;;  %868 = vrot.lane.b32.xlu0 %v4310_v50, %s3840_s27  ;;  %v382_v42 = vrot.slane %v353_v27, 4  ;;  %v383_v43 = vrot.slane %v354_v29, 4 }
 0x103   : > { %v425_v62 = vpop.permute.xlu1 %424  ;;  %v423_v63 = vpop.permute.xlu0 %422 }
 0x104   : > { %v426_v13 = vsel %vm310_vm4, %v423_v63, %v425_v62  ;;  %v427_v16 = vsel %vm310_vm4, %v425_v62, %v423_v63 }
 0x105   : > { %769 = vrot.lane.b32.xlu1 %v4250_v15, %s3844_s22  ;;  %767 = vrot.lane.b32.xlu0 %v4240_v11, %s3844_s22  ;;  %v494_v23 = vsel %vm386_vm5, %v427_v16, %v472_v17  ;;  %v495_v24 = vsel %vm386_vm5, %v426_v13, %v473_v18 }
 0x106   : > { %v504_v37 = vmul.f32 %v494_v23, %v4281_v35  ;;  %v505_v39 = vmul.f32 %v495_v24, %v4276_v28 }
 0x107   : > { %v437_v25 = vpop.permute.xlu1 %436  ;;  %v435_v26 = vpop.permute.xlu0 %434 }
 0x108   : > { %v438_v30 = vsel %vm324_vm6, %v435_v26, %v437_v25  ;;  %v439_v31 = vsel %vm324_vm6, %v437_v25, %v435_v26 }
 0x109   : > { %v496_v32 = vsel %vm386_vm5, %v439_v31, %v478_v19  ;;  %v497_v34 = vsel %vm386_vm5, %v438_v30, %v479_v20  ;;  %781 = vrot.lane.b32.xlu1 %v4250_v15, %s3846_s28  ;;  %779 = vrot.lane.b32.xlu0 %v4240_v11, %s3846_s28 }
 0x10a   : > { %v506_v38 = vmul.f32 %v496_v32, %v4283_v36  ;;  %v507_v40 = vmul.f32 %v497_v34, %v4278_v33 }
 0x10b   : > { %v344_v44 = vpop.permute.xlu1 %343  ;;  %v342_v45 = vpop.permute.xlu0 %341 }
 0x10c   : > { %v346_v55 = vsel %vm345_vm9, %v342_v45, %v344_v44  ;;  %v347_v56 = vsel %vm345_vm9, %v344_v44, %v342_v45  ;;  %v4388_v57 = vpack.c.bf16 %v507_v40, %v505_v39  ;;  %v4390_v58 = vpack.c.bf16 %v506_v38, %v504_v37 }
 0x10d   : > { %v393_v59 = vsel %vm386_vm5, %v346_v55, %v382_v42  ;;  %v394_v60 = vsel %vm386_vm5, %v347_v56, %v383_v43  ;;  %680 = vrot.lane.b32.xlu1 %v4197_v9, %s3849_s7  ;;  %678 = vrot.lane.b32.xlu0 %v4189_v8, %s3849_s7 }
 0x10e   : > { %3356 = vmatprep.subr.bf16.mxu0 %v4388_v57  ;;  %v404_v1 = vmul.f32 %v394_v60, %v4376_v47  ;;  %v403_v62 = vmul.f32 %v393_v59, %v4380_v52  ;;  %v4462_v59 = vld [vmem:[#allocation8 + $0x40] sm:$0xff]  ;;  %v4464_v60 = vld [vmem:[#allocation8 + $0x48] sm:$0xff] }
 0x10f   : > { %v449_v63 = vpop.permute.xlu1 %448  ;;  %v447_v10 = vpop.permute.xlu0 %446  ;;  %3358 = vmatpush1.bf16.msra.mxu0 %v4390_v58 }
 0x110   : > { %v450_v12 = vsel %vm338_vm7, %v447_v10, %v449_v63  ;;  %v451_v13 = vsel %vm338_vm7, %v449_v63, %v447_v10  ;;  %v4408_v16 = vpack.c.bf16 %v404_v1, %v402_v0  ;;  %v4410_v17 = vpack.c.bf16 %v403_v62, %v401_v61 }
 0x111   : > { %852 = vrot.lane.b32.xlu1 %v4319_v53, %s3842_s25  ;;  %850 = vrot.lane.b32.xlu0 %v4310_v50, %s3842_s25  ;;  %v484_v18 = vrot.slane %v450_v12, 4  ;;  %v485_v19 = vrot.slane %v451_v13, 4  ;;  %v4478_v63 = vcombine.high %v4460_v54, %v4460_v54 }
 0x112   : > { %3352 = vmatprep.subr.bf16.mxu1 %v4408_v16 }
 0x113   : > { %v461_v20 = vpop.permute.xlu1 %460  ;;  %v459_v21 = vpop.permute.xlu0 %458  ;;  %3354 = vmatpush1.bf16.msra.mxu1 %v4410_v17  ;;  %v498_v24 = vsel %vm386_vm5, %v4105_v2, %v484_v18  ;;  %v499_v30 = vsel %vm386_vm5, %v4113_v3, %v485_v19 }
 0x114   : > { %v462_v22 = vsel %vm352_vm8, %v459_v21, %v461_v20  ;;  %v463_v23 = vsel %vm352_vm8, %v461_v20, %v459_v21  ;;  %v508_v2 = vmul.f32 %v498_v24, %v4372_v41  ;;  %v509_v38 = vmul.f32 %v499_v30, %v4374_v46 }
 0x115   : > { %864 = vrot.lane.b32.xlu1 %v4319_v53, %s3843_s23  ;;  %862 = vrot.lane.b32.xlu0 %v4310_v50, %s3843_s23  ;;  %v490_v25 = vrot.slane %v462_v22, 4  ;;  %v491_v26 = vrot.slane %v463_v23, 4 }
 0x117   : > { %v455_v27 = vpop.permute.xlu1 %454  ;;  %v453_v29 = vpop.permute.xlu0 %452 }
 0x118   : > { %v456_v31 = vsel %vm345_vm9, %v453_v29, %v455_v27  ;;  %v457_v32 = vsel %vm345_vm9, %v455_v27, %v453_v29 }
 0x119   : > { %v500_v34 = vsel %vm386_vm5, %v456_v31, %v490_v25  ;;  %v501_v37 = vsel %vm386_vm5, %v457_v32, %v491_v26  ;;  %775 = vrot.lane.b32.xlu1 %v4250_v15, %s3848_s5  ;;  %773 = vrot.lane.b32.xlu0 %v4240_v11, %s3848_s5 }
 0x11a   : > { %v510_v3 = vmul.f32 %v500_v34, %v4380_v52  ;;  %v511_v39 = vmul.f32 %v501_v37, %v4376_v47 }
 0x11b   : > { %v538_v40 = vpop.permute.xlu1 %537  ;;  %v536_v42 = vpop.permute.xlu0 %535 }
 0x11c   : > { %v4444_v43 = vpack.c.bf16 %v511_v39, %v509_v38  ;;  %v4446_v44 = vpack.c.bf16 %v510_v3, %v508_v2  ;;  %v539_v10 = vsel %vm317_vm3, %v536_v42, %v538_v40  ;;  %v540_v12 = vsel %vm317_vm3, %v538_v40, %v536_v42 }
 0x11d   : > { %876 = vrot.lane.b32.xlu1 %v4319_v53, %s3844_s22  ;;  %874 = vrot.lane.b32.xlu0 %v4310_v50, %s3844_s22  ;;  %v579_v25 = vrot.slane %v540_v12, 4  ;;  %v580_v26 = vrot.slane %v539_v10, 4 }
 0x11e   : > { %3360 = vmatprep.subr.bf16.mxu0 %v4444_v43 }
 0x11f   : > { %v550_v45 = vpop.permute.xlu1 %549  ;;  %v548_v51 = vpop.permute.xlu0 %547  ;;  %3362 = vmatpush1.bf16.msra.mxu0 %v4446_v44 }
 0x120   : > { %v551_v21 = vsel %vm331_vm2, %v548_v51, %v550_v45  ;;  %v552_v22 = vsel %vm331_vm2, %v550_v45, %v548_v51 }
 0x121   : > { %888 = vrot.lane.b32.xlu1 %v4319_v53, %s3846_s28  ;;  %886 = vrot.lane.b32.xlu0 %v4310_v50, %s3846_s28  ;;  %v585_v27 = vrot.slane %v552_v22, 4  ;;  %v586_v29 = vrot.slane %v551_v21, 4 }
 0x123   : > { %v358_v55 = vpop.permute.xlu1 %357  ;;  %v356_v56 = vpop.permute.xlu0 %355 }
 0x124   : > { %v360_v0 = vsel %vm359_vm10, %v356_v56, %v358_v55  ;;  %v361_v1 = vsel %vm359_vm10, %v358_v55, %v356_v56 }
 0x125   : > { %v395_v61 = vsel %vm386_vm5, %v360_v0, 0.0  ;;  %v396_v62 = vsel %vm386_vm5, %v361_v1, 0.0  ;;  %882 = vrot.lane.b32.xlu1 %v4319_v53, %s3848_s5  ;;  %880 = vrot.lane.b32.xlu0 %v4310_v50, %s3848_s5 }
 0x126   : > { %v4485_v13 = vmul.f32 %v395_v61, %v4462_v59  ;;  %v4488_v18 = vmul.f32 %v396_v62, %v4464_v60 }
 0x127   : > { %v532_v19 = vpop.permute.xlu1 %531  ;;  %v530_v20 = vpop.permute.xlu0 %529 }
 0x128   : > { %v533_v23 = vsel %vm310_vm4, %v530_v20, %v532_v19  ;;  %v534_v24 = vsel %vm310_vm4, %v532_v19, %v530_v20  ;;  %1342 = vmatprep.subr.mxu1 %v4488_v18 }
 0x129   : > { %965 = vrot.lane.b32.xlu1 %v4478_v63, %s3841_s21  ;;  %963 = vrot.lane.b32.xlu0 %v4460_v54, %s3841_s21  ;;  %v601_v30 = vsel %vm386_vm5, %v534_v24, %v579_v25  ;;  %v602_v31 = vsel %vm386_vm5, %v533_v23, %v580_v26 }
 0x12a   : > { %1343 = vmatpush1.msra.mxu1 %v4485_v13  ;;  %v611_v39 = vmul.f32 %v601_v30, %v4281_v35  ;;  %v612_v40 = vmul.f32 %v602_v31, %v4276_v28 }
 0x12b   : > { %v544_v32 = vpop.permute.xlu1 %543  ;;  %v542_v34 = vpop.permute.xlu0 %541  ;;  %3296 = vmatmul.mubr.msk.f32.vlgmr.msra.gmra.mrb[0].mxu1 %vm1259_vm1, %v4136_v5 }
 0x12c   : > { %v545_v37 = vsel %vm324_vm6, %v542_v34, %v544_v32  ;;  %v546_v2 = vsel %vm324_vm6, %v544_v32, %v542_v34  ;;  %1540 = vmatprep.mubr.f32.mxu1 %v5239_v4 }
 0x12d   : > { %v603_v3 = vsel %vm386_vm5, %v546_v2, %v585_v27  ;;  %v604_v38 = vsel %vm386_vm5, %v545_v37, %v586_v29  ;;  %977 = vrot.lane.b32.xlu1 %v4478_v63, %s3840_s27  ;;  %975 = vrot.lane.b32.xlu0 %v4460_v54, %s3840_s27 }
 0x12e   : > { %v613_v42 = vmul.f32 %v603_v3, %v4283_v36  ;;  %v614_v45 = vmul.f32 %v604_v38, %v4278_v33 }
 0x12f   : > { %v645_v51 = vpop.permute.xlu1 %644  ;;  %v643_v55 = vpop.permute.xlu0 %642 }
 0x130   : > { %v4523_v56 = vpack.c.bf16 %v613_v42, %v611_v39  ;;  %v4525_v0 = vpack.c.bf16 %v614_v45, %v612_v40  ;;  %v646_v26 = vsel %vm317_vm3, %v643_v55, %v645_v51  ;;  %v647_v27 = vsel %vm317_vm3, %v645_v51, %v643_v55 }
 0x131   : > { %787 = vrot.lane.b32.xlu1 %v4250_v15, %s3849_s7  ;;  %785 = vrot.lane.b32.xlu0 %v4240_v11, %s3849_s7  ;;  %v686_v40 = vrot.slane %v647_v27, 4  ;;  %v687_v42 = vrot.slane %v646_v26, 4 }
 0x132   : > { %3364 = vmatprep.subr.bf16.mxu1 %v4525_v0 }
 0x133   : > { %v657_v1 = vpop.permute.xlu1 %656  ;;  %v655_v61 = vpop.permute.xlu0 %654  ;;  %3366 = vmatpush1.bf16.msra.mxu1 %v4523_v56 }
 0x134   : > { %v658_v31 = vsel %vm331_vm2, %v655_v61, %v657_v1  ;;  %v659_v32 = vsel %vm331_vm2, %v657_v1, %v655_v61 }
 0x135   : > { %959 = vrot.lane.b32.xlu1 %v4478_v63, %s3842_s25  ;;  %957 = vrot.lane.b32.xlu0 %v4460_v54, %s3842_s25  ;;  %v692_v45 = vrot.slane %v659_v32, 4  ;;  %v693_v51 = vrot.slane %v658_v31, 4  ;;  %v4607_v32 = vld [vmem:[%s4075_s11 + $0x38] sm:$0xff] }
 0x136   : > { %5258 = vst [vmem:[#allocation13_spill] sm:$0xff] %v4607_v32 }
 0x137   : > { %v556_v62 = vpop.permute.xlu1 %555  ;;  %v554_v10 = vpop.permute.xlu0 %553 }
 0x138   : > { %v557_v2 = vsel %vm338_vm7, %v554_v10, %v556_v62  ;;  %v558_v3 = vsel %vm338_vm7, %v556_v62, %v554_v10 }
 0x139   : > { %971 = vrot.lane.b32.xlu1 %v4478_v63, %s3843_s23  ;;  %969 = vrot.lane.b32.xlu0 %v4460_v54, %s3843_s23  ;;  %v591_v55 = vrot.slane %v557_v2, 4  ;;  %v592_v1 = vrot.slane %v558_v3, 4 }
 0x13b   : > { %v568_v12 = vpop.permute.xlu1 %567  ;;  %v566_v19 = vpop.permute.xlu0 %565 }
 0x13d   : > { %983 = vrot.lane.b32.xlu1 %v4478_v63, %s3844_s22  ;;  %981 = vrot.lane.b32.xlu0 %v4460_v54, %s3844_s22 }
 0x13f   : > { %v467_v20 = vpop.permute.xlu1 %466  ;;  %v465_v21 = vpop.permute.xlu0 %464 }
 0x140   : > { %v468_v22 = vsel %vm359_vm10, %v465_v21, %v467_v20  ;;  %v469_v23 = vsel %vm359_vm10, %v467_v20, %v465_v21  ;;  %v569_v21 = vsel %vm352_vm8, %v566_v19, %v568_v12 }
 0x141   : > { %v502_v24 = vsel %vm386_vm5, %v468_v22, 0.0  ;;  %v503_v25 = vsel %vm386_vm5, %v469_v23, 0.0  ;;  %995 = vrot.lane.b32.xlu1 %v4478_v63, %s3846_s28  ;;  %993 = vrot.lane.b32.xlu0 %v4460_v54, %s3846_s28  ;;  %v570_v22 = vsel %vm352_vm8, %v568_v12, %v566_v19  ;;  %v597_v2 = vrot.slane %v569_v21, 4 }
 0x142   : > { %v4560_v29 = vmul.f32 %v502_v24, %v4462_v59  ;;  %v4563_v30 = vmul.f32 %v503_v25, %v4464_v60  ;;  %v598_v3 = vrot.slane %v570_v22, 4 }
 0x143   : > { %v639_v34 = vpop.permute.xlu1 %638  ;;  %v637_v37 = vpop.permute.xlu0 %636 }
 0x144   : > { %v640_v38 = vsel %vm310_vm4, %v637_v37, %v639_v34  ;;  %v641_v39 = vsel %vm310_vm4, %v639_v34, %v637_v37  ;;  %1413 = vmatprep.subr.mxu0 %v4563_v30  ;;  %v605_v34 = vsel %vm386_vm5, %v4162_v6, %v591_v55  ;;  %v606_v37 = vsel %vm386_vm5, %v4170_v7, %v592_v1 }
 0x145   : > { %894 = vrot.lane.b32.xlu1 %v4319_v53, %s3849_s7  ;;  %892 = vrot.lane.b32.xlu0 %v4310_v50, %s3849_s7  ;;  %v708_v61 = vsel %vm386_vm5, %v641_v39, %v686_v40  ;;  %v709_v62 = vsel %vm386_vm5, %v640_v38, %v687_v42  ;;  %v4629_v7 = vcombine.high %v4607_v32, %v4607_v32 }
 0x146   : > { %1414 = vmatpush1.msra.mxu0 %v4560_v29  ;;  %v718_v12 = vmul.f32 %v708_v61, %v4281_v35  ;;  %v719_v19 = vmul.f32 %v709_v62, %v4276_v28  ;;  %v615_v55 = vmul.f32 %v605_v34, %v4372_v41 }
 0x147   : > { %v651_v10 = vpop.permute.xlu1 %650  ;;  %v649_v20 = vpop.permute.xlu0 %648  ;;  %3297 = vmatmul.mubr.msk.f32.vlgmr.msra.gmra.mrb[2].mxu0 %vm1259_vm1, %v4136_v5  ;;  %5259 = vst [vmem:[#allocation14_spill] sm:$0xff] %v4629_v7 }
 0x148   : > { %v652_v23 = vsel %vm324_vm6, %v649_v20, %v651_v10  ;;  %v653_v24 = vsel %vm324_vm6, %v651_v10, %v649_v20  ;;  %1611 = vmatprep.mubr.f32.mxu0 %v5239_v4  ;;  %v616_v10 = vmul.f32 %v606_v37, %v4374_v46 }
 0x149   : > { %v710_v25 = vsel %vm386_vm5, %v653_v24, %v692_v45  ;;  %v711_v26 = vsel %vm386_vm5, %v652_v23, %v693_v51  ;;  %989 = vrot.lane.b32.xlu1 %v4478_v63, %s3848_s5  ;;  %987 = vrot.lane.b32.xlu0 %v4460_v54, %s3848_s5 }
 0x14a   : > { %v720_v27 = vmul.f32 %v710_v25, %v4283_v36  ;;  %v721_v31 = vmul.f32 %v711_v26, %v4278_v33 }
 0x14b   : > { %v562_v38 = vpop.permute.xlu1 %561  ;;  %v560_v39 = vpop.permute.xlu0 %559 }
 0x14c   : > { %v4613_v40 = vpack.c.bf16 %v720_v27, %v718_v12  ;;  %v563_v42 = vsel %vm345_vm9, %v560_v39, %v562_v38  ;;  %v564_v45 = vsel %vm345_vm9, %v562_v38, %v560_v39  ;;  %v4619_v51 = vpack.c.bf16 %v721_v31, %v719_v19 }
 0x14d   : > { %v607_v61 = vsel %vm386_vm5, %v563_v42, %v597_v2  ;;  %v608_v6 = vsel %vm386_vm5, %v564_v45, %v598_v3  ;;  %1001 = vrot.lane.b32.xlu1 %v4478_v63, %s3849_s7  ;;  %999 = vrot.lane.b32.xlu0 %v4460_v54, %s3849_s7 }
 0x14e   : > { %v617_v1 = vmul.f32 %v607_v61, %v4380_v52  ;;  %v618_v62 = vmul.f32 %v608_v6, %v4376_v47  ;;  %3372 = vmatprep.subr.bf16.mxu0 %v4619_v51 }
 0x14f   : > { %v663_v20 = vpop.permute.xlu1 %662  ;;  %v661_v21 = vpop.permute.xlu0 %660  ;;  %3374 = vmatpush1.bf16.msra.mxu0 %v4613_v40 }
 0x150   : > { %v4637_v22 = vpack.c.bf16 %v617_v1, %v615_v55  ;;  %v664_v23 = vsel %vm338_vm7, %v661_v21, %v663_v20  ;;  %v665_v24 = vsel %vm338_vm7, %v663_v20, %v661_v21  ;;  %v4643_v25 = vpack.c.bf16 %v618_v62, %v616_v10 }
 0x151   : > { %1072 = vrot.lane.b32.xlu1 %v4629_v7, %s3841_s21  ;;  %1070 = vrot.lane.b32.xlu0 %v4607_v32, %s3841_s21  ;;  %v698_v26 = vrot.slane %v664_v23, 4  ;;  %v699_v12 = vrot.slane %v665_v24, 4  ;;  %s5179_s21 = scalar_lea.hbm %s5234_s4, %s3325_s29 }
 0x152   : > { %3368 = vmatprep.subr.bf16.mxu1 %v4643_v25 }
 0x153   : > { %v675_v19 = vpop.permute.xlu1 %674  ;;  %v673_v27 = vpop.permute.xlu0 %672  ;;  %3370 = vmatpush1.bf16.msra.mxu1 %v4637_v22  ;;  %v712_v37 = vsel %vm386_vm5, %v4189_v8, %v698_v26  ;;  %v713_v2 = vsel %vm386_vm5, %v4197_v9, %v699_v12 }
 0x154   : > { %v676_v31 = vsel %vm352_vm8, %v673_v27, %v675_v19  ;;  %v677_v34 = vsel %vm352_vm8, %v675_v19, %v673_v27  ;;  %v722_v8 = vmul.f32 %v712_v37, %v4372_v41  ;;  %v723_v62 = vmul.f32 %v713_v2, %v4374_v46 }
 0x155   : > { %1084 = vrot.lane.b32.xlu1 %v4629_v7, %s3840_s27  ;;  %1082 = vrot.lane.b32.xlu0 %v4607_v32, %s3840_s27  ;;  %v704_v3 = vrot.slane %v676_v31, 4  ;;  %v705_v38 = vrot.slane %v677_v34, 4 }
 0x157   : > { %v669_v39 = vpop.permute.xlu1 %668  ;;  %v667_v42 = vpop.permute.xlu0 %666 }
 0x158   : > { %v670_v45 = vsel %vm345_vm9, %v667_v42, %v669_v39  ;;  %v671_v61 = vsel %vm345_vm9, %v669_v39, %v667_v42 }
 0x159   : > { %v714_v6 = vsel %vm386_vm5, %v670_v45, %v704_v3  ;;  %v715_v55 = vsel %vm386_vm5, %v671_v61, %v705_v38  ;;  %1066 = vrot.lane.b32.xlu1 %v4629_v7, %s3842_s25  ;;  %1064 = vrot.lane.b32.xlu0 %v4607_v32, %s3842_s25  ;;  %s3745_s25 = scalar_lea.vmem %s5181_s24, 2048 }
 0x15a   : > { %v724_v9 = vmul.f32 %v714_v6, %v4380_v52  ;;  %v725_v1 = vmul.f32 %v715_v55, %v4376_v47  ;;  %p3746_p8 = scmp.ne.s32.totalorder %s5181_s24, %s3745_s25 }
 0x15b   : > { %v752_v10 = vpop.permute.xlu1 %751  ;;  %v750_v20 = vpop.permute.xlu0 %749 }
 0x15c   : > { %v4677_v21 = vpack.c.bf16 %v724_v9, %v722_v8  ;;  %v4679_v23 = vpack.c.bf16 %v725_v1, %v723_v62  ;;  %v753_v2 = vsel %vm317_vm3, %v750_v20, %v752_v10  ;;  %v754_v3 = vsel %vm317_vm3, %v752_v10, %v750_v20  ;;  %p3747_p1 = pnand %p3746_p8, %p5269_p12 }
 0x15d   : > { %1078 = vrot.lane.b32.xlu1 %v4629_v7, %s3843_s23  ;;  %1076 = vrot.lane.b32.xlu0 %v4607_v32, %s3843_s23  ;;  %v793_v9 = vrot.slane %v754_v3, 4  ;;  %v794_v1 = vrot.slane %v753_v2, 4  ;;  %s3851_s23 = smov [#allocation9]  }
 0x15e   : > { %3376 = vmatprep.subr.bf16.mxu0 %v4679_v23  ;;  %p3748_p10 = pneg %p3747_p1 }
 0x15f   : > { %v764_v24 = vpop.permute.xlu1 %763  ;;  %v762_v26 = vpop.permute.xlu0 %761  ;;  %3378 = vmatpush1.bf16.msra.mxu0 %v4677_v21 }
 0x160   : > { %v765_v61 = vsel %vm331_vm2, %v762_v26, %v764_v24  ;;  %v766_v6 = vsel %vm331_vm2, %v764_v24, %v762_v26 }
 0x161   : > { %1090 = vrot.lane.b32.xlu1 %v4629_v7, %s3844_s22  ;;  %1088 = vrot.lane.b32.xlu0 %v4607_v32, %s3844_s22  ;;  %v799_v62 = vrot.slane %v766_v6, 4  ;;  %v800_v10 = vrot.slane %v765_v61, 4  ;;  %s3749_s22 = sshll.u32 %s3851_s23, 4  ;;  %s3750_s22 = int_to_ptr.vmem [resolvable:$false] %s3749_s22 }
 0x162   : > { %p3752_p3 = scmp.lt.s32.totalorder %s5181_s24, %s3750_s22 }
 0x163   : > { %v574_v12 = vpop.permute.xlu1 %573  ;;  %v572_v19 = vpop.permute.xlu0 %571 }
 0x164   : > { %v575_v27 = vsel %vm359_vm10, %v572_v19, %v574_v12  ;;  %v576_v31 = vsel %vm359_vm10, %v574_v12, %v572_v19 }
 0x165   : > { %v609_v34 = vsel %vm386_vm5, %v575_v27, 0.0  ;;  %v610_v37 = vsel %vm386_vm5, %v576_v31, 0.0  ;;  %1102 = vrot.lane.b32.xlu1 %v4629_v7, %s3846_s28  ;;  %1100 = vrot.lane.b32.xlu0 %v4607_v32, %s3846_s28  ;;  %s3751_s28 = scalar_lea.vmem %s3750_s22, 4096 }
 0x166   : > { %v4706_v38 = vmul.f32 %v609_v34, %v4462_v59  ;;  %v4709_v39 = vmul.f32 %v610_v37, %v4464_v60  ;;  %p3753_p5 = scmp.lt.s32.totalorder %s3751_s28, %s3745_s25 }
 0x167   : > { %v746_v42 = vpop.permute.xlu1 %745  ;;  %v744_v45 = vpop.permute.xlu0 %743 }
 0x168   : > { %v747_v55 = vsel %vm310_vm4, %v744_v45, %v746_v42  ;;  %v748_v8 = vsel %vm310_vm4, %v746_v42, %v744_v45  ;;  %1484 = vmatprep.subr.mxu1 %v4709_v39  ;;  %p3754_p9 = por %p3753_p5, %p3752_p3 }
 0x169   : > { %1485 = vmatpush1.msra.mxu1 %v4706_v38  ;;  %1096 = vrot.lane.b32.xlu1 %v4629_v7, %s3848_s5  ;;  %v815_v20 = vsel %vm386_vm5, %v748_v8, %v793_v9  ;;  %v816_v24 = vsel %vm386_vm5, %v747_v55, %v794_v1 }
 0x16a   : > { %3298 = vmatmul.mubr.msk.f32.vlgmr.msra.gmra.mrb[2].mxu1 %vm1259_vm1, %v4136_v5  ;;  %1094 = vrot.lane.b32.xlu0 %v4607_v32, %s3848_s5  ;;  %v825_v37 = vmul.f32 %v815_v20, %v4281_v35  ;;  %v826_v2 = vmul.f32 %v816_v24, %v4276_v28  ;;  %p3755_p11 = pnand %p3754_p9, %p3748_p10 }
 0x16b   : > { %v758_v26 = vpop.permute.xlu1 %757  ;;  %v756_v12 = vpop.permute.xlu0 %755  ;;  %1682 = vmatprep.mubr.f32.mxu1 %v5239_v4 }
 0x16c   : > { %v759_v19 = vsel %vm324_vm6, %v756_v12, %v758_v26  ;;  %v760_v27 = vsel %vm324_vm6, %v758_v26, %v756_v12 }
 0x16d   : > { %v817_v31 = vsel %vm386_vm5, %v760_v27, %v799_v62  ;;  %v818_v34 = vsel %vm386_vm5, %v759_v19, %v800_v10  ;;  %1108 = vrot.lane.b32.xlu1 %v4629_v7, %s3849_s7 }
 0x16e   : > { %v827_v3 = vmul.f32 %v817_v31, %v4283_v36  ;;  %v828_v42 = vmul.f32 %v818_v34, %v4278_v33  ;;  %1106 = vrot.lane.b32.xlu0 %v4607_v32, %s3849_s7 }
 0x16f   : > { %v859_v45 = vpop.permute.xlu1 %858  ;;  %v857_v61 = vpop.permute.xlu0 %856 }
 0x170   : > { %v4744_v6 = vpack.c.bf16 %v827_v3, %v825_v37  ;;  %v4746_v55 = vpack.c.bf16 %v828_v42, %v826_v2  ;;  %v860_v34 = vsel %vm317_vm3, %v857_v61, %v859_v45  ;;  %v861_v37 = vsel %vm317_vm3, %v859_v45, %v857_v61 }
 0x171   : > { %v901_v4 = vrot.slane %v860_v34, 4 }
 0x172   : > { %5260 = vst [vmem:[#allocation15_spill] sm:$0xff] %v4744_v6  ;;  %5261 = vst [vmem:[#allocation16_spill] sm:$0xff] %v4746_v55  ;;  %3380 = vmatprep.subr.bf16.mxu1 %v4746_v55 }
 0x173   : > { %v871_v8 = vpop.permute.xlu1 %870  ;;  %v869_v9 = vpop.permute.xlu0 %868  ;;  %3382 = vmatpush1.bf16.msra.mxu1 %v4744_v6 }
 0x174   : > { %v872_v42 = vsel %vm331_vm2, %v869_v9, %v871_v8 }
 0x177   : > { %v770_v1 = vpop.permute.xlu1 %769  ;;  %v768_v62 = vpop.permute.xlu0 %767 }
 0x178   : > { %v772_v45 = vsel %vm338_vm7, %v770_v1, %v768_v62 }
 0x179   : > { %v806_v7 = vrot.slane %v772_v45, 4 }
 0x17b   : > { %v782_v10 = vpop.permute.xlu1 %781  ;;  %v780_v20 = vpop.permute.xlu0 %779 }
 0x17c   : > { %v783_v34 = vsel %vm352_vm8, %v780_v20, %v782_v10 }
 0x17f   : > { %v681_v24 = vpop.permute.xlu1 %680  ;;  %v679_v26 = vpop.permute.xlu0 %678 }
 0x180   : > { %v682_v12 = vsel %vm359_vm10, %v679_v26, %v681_v24  ;;  %v683_v19 = vsel %vm359_vm10, %v681_v24, %v679_v26  ;;  %v873_v24 = vsel %vm331_vm2, %v871_v8, %v869_v9  ;;  %v907_v9 = vrot.slane %v872_v42, 4 }
 0x181   : > { %v716_v27 = vsel %vm386_vm5, %v682_v12, 0.0  ;;  %v717_v31 = vsel %vm386_vm5, %v683_v19, 0.0  ;;  %v771_v19 = vsel %vm338_vm7, %v768_v62, %v770_v1  ;;  %v906_v8 = vrot.slane %v873_v24, 4 }
 0x182   : > { %v4761_v2 = vmul.f32 %v716_v27, %v4462_v59  ;;  %v4764_v3 = vmul.f32 %v717_v31, %v4464_v60  ;;  %v900_v31 = vrot.slane %v861_v37, 4  ;;  %v805_v32 = vrot.slane %v771_v19, 4 }
 0x183   : > { %v853_v26 = vpop.permute.xlu1 %852  ;;  %v851_v12 = vpop.permute.xlu0 %850  ;;  %v784_v37 = vsel %vm352_vm8, %v782_v10, %v780_v20  ;;  %v820_v20 = vsel %vm386_vm5, %v4250_v15, %v806_v7 }
 0x184   : > { %v854_v61 = vsel %vm310_vm4, %v851_v12, %v853_v26  ;;  %v855_v27 = vsel %vm310_vm4, %v853_v26, %v851_v12  ;;  %1555 = vmatprep.subr.mxu0 %v4764_v3  ;;  %v5262_v26 = vmov 0.0   ;;  %v819_v10 = vsel %vm386_vm5, %v4240_v11, %v805_v32 }
 0x185   : > { %1556 = vmatpush1.msra.mxu0 %v4761_v2  ;;  %v922_v1 = vsel %vm386_vm5, %v855_v27, %v900_v31  ;;  %v923_v62 = vsel %vm386_vm5, %v854_v61, %v901_v4  ;;  %v811_v27 = vrot.slane %v783_v34, 4  ;;  %v829_v15 = vmul.f32 %v819_v10, %v4372_v41 }
 0x186   : > { %3299 = vmatmul.mubr.msk.f32.vlgmr.msra.gmra.mrb[4].mxu0 %vm1259_vm1, %v4136_v5  ;;  %v932_v12 = vmul.f32 %v922_v1, %v4281_v35  ;;  %v933_v19 = vmul.f32 %v923_v62, %v4276_v28  ;;  %v830_v1 = vmul.f32 %v820_v20, %v4374_v46 }
 0x187   : > { %v865_v6 = vpop.permute.xlu1 %864  ;;  %v863_v55 = vpop.permute.xlu0 %862  ;;  %1753 = vmatprep.mubr.f32.mxu0 %v5262_v26 }
 0x188   : > { %v866_v42 = vsel %vm324_vm6, %v863_v55, %v865_v6  ;;  %v867_v5 = vsel %vm324_vm6, %v865_v6, %v863_v55  ;;  %v812_v6 = vrot.slane %v784_v37, 4  ;;  %v3071_v37 = vld [vmem:[%s5232_s2] sm:$0xff] }
 0x189   : > { %v924_v24 = vsel %vm386_vm5, %v867_v5, %v906_v8  ;;  %v925_v4 = vsel %vm386_vm5, %v866_v42, %v907_v9 }
 0x18a   : > { %v934_v45 = vmul.f32 %v924_v24, %v4283_v36  ;;  %v935_v61 = vmul.f32 %v925_v4, %v4278_v33 }
 0x18b   : > { %v776_v55 = vpop.permute.xlu1 %775  ;;  %v774_v31 = vpop.permute.xlu0 %773 }
 0x18c   : > { %v4803_v8 = vpack.c.bf16 %v934_v45, %v932_v12  ;;  %v777_v9 = vsel %vm345_vm9, %v774_v31, %v776_v55  ;;  %v778_v28 = vsel %vm345_vm9, %v776_v55, %v774_v31  ;;  %v4809_v36 = vpack.c.bf16 %v935_v61, %v933_v19 }
 0x18d   : > { %v821_v33 = vsel %vm386_vm5, %v777_v9, %v811_v27  ;;  %v822_v11 = vsel %vm386_vm5, %v778_v28, %v812_v6  ;;  %v3850_v12 = vmov 0  }
 0x18e   : > { %v831_v32 = vmul.f32 %v821_v33, %v4380_v52  ;;  %v832_v7 = vmul.f32 %v822_v11, %v4376_v47  ;;  %3388 = vmatprep.subr.bf16.mxu0 %v4809_v36  ;;  %3639 = vset.pattern.permute.xlu0 %v3850_v12 }
 0x18f   : > { %v877_v62 = vpop.permute.xlu1 %876  ;;  %v875_v34 = vpop.permute.xlu0 %874  ;;  %3390 = vmatpush1.bf16.msra.mxu0 %v4803_v8  ;;  %3074 = vperm.xlu0 %3639, %v3071_v37  }
 0x190   : > { %v4822_v42 = vpack.c.bf16 %v831_v32, %v829_v15  ;;  %v878_v5 = vsel %vm338_vm7, %v875_v34, %v877_v62  ;;  %v879_v24 = vsel %vm338_vm7, %v877_v62, %v875_v34  ;;  %v4828_v4 = vpack.c.bf16 %v832_v7, %v830_v1 }
 0x191   : > { %v912_v19 = vrot.slane %v878_v5, 4  ;;  %v913_v45 = vrot.slane %v879_v24, 4 }
 0x192   : > { %3384 = vmatprep.subr.bf16.mxu1 %v4828_v4 }
 0x193   : > { %v889_v61 = vpop.permute.xlu1 %888  ;;  %v887_v10 = vpop.permute.xlu0 %886  ;;  %3386 = vmatpush1.bf16.msra.mxu1 %v4822_v42  ;;  %v926_v6 = vsel %vm386_vm5, %v4310_v50, %v912_v19  ;;  %v927_v55 = vsel %vm386_vm5, %v4319_v53, %v913_v45 }
 0x194   : > { %v890_v20 = vsel %vm352_vm8, %v887_v10, %v889_v61  ;;  %v891_v27 = vsel %vm352_vm8, %v889_v61, %v887_v10  ;;  %v936_v1 = vmul.f32 %v926_v6, %v4372_v41  ;;  %v937_v62 = vmul.f32 %v927_v55, %v4374_v46 }
 0x195   : > { %v918_v31 = vrot.slane %v890_v20, 4  ;;  %v919_v9 = vrot.slane %v891_v27, 4 }
 0x197   : > { %v883_v28 = vpop.permute.xlu1 %882  ;;  %v881_v33 = vpop.permute.xlu0 %880 }
 0x198   : > { %v884_v11 = vsel %vm345_vm9, %v881_v33, %v883_v28  ;;  %v885_v15 = vsel %vm345_vm9, %v883_v28, %v881_v33 }
 0x199   : > { %v928_v32 = vsel %vm386_vm5, %v884_v11, %v918_v31  ;;  %v929_v7 = vsel %vm386_vm5, %v885_v15, %v919_v9 }
 0x19a   : > { %v938_v50 = vmul.f32 %v928_v32, %v4380_v52  ;;  %v939_v53 = vmul.f32 %v929_v7, %v4376_v47 }
 0x19b   : > { %v966_v34 = vpop.permute.xlu1 %965  ;;  %v964_v37 = vpop.permute.xlu0 %963 }
 0x19c   : > { %v4850_v5 = vpack.c.bf16 %v938_v50, %v936_v1  ;;  %v4852_v24 = vpack.c.bf16 %v939_v53, %v937_v62  ;;  %v967_v55 = vsel %vm317_vm3, %v964_v37, %v966_v34  ;;  %v968_v31 = vsel %vm317_vm3, %v966_v34, %v964_v37  ;;  %v4882_v62 = vld [vmem:[#allocation6 + $0x8] sm:$0xff] }
 0x19d   : > { %v1007_v50 = vrot.slane %v968_v31, 4  ;;  %v1008_v53 = vrot.slane %v967_v55, 4  ;;  %v4896_v31 = vld [vmem:[#allocation8 + $0x8] sm:$0xff] }
 0x19e   : > { %3392 = vmatprep.subr.bf16.mxu0 %v4852_v24 }
 0x19f   : > { %v978_v12 = vpop.permute.xlu1 %977  ;;  %v976_v19 = vpop.permute.xlu0 %975  ;;  %3394 = vmatpush1.bf16.msra.mxu0 %v4850_v5 }
 0x1a0   : > { %v979_v15 = vsel %vm331_vm2, %v976_v19, %v978_v12  ;;  %v980_v32 = vsel %vm331_vm2, %v978_v12, %v976_v19 }
 0x1a1   : > { %v1013_v34 = vrot.slane %v980_v32, 4  ;;  %v1014_v37 = vrot.slane %v979_v15, 4  ;;  %v4902_v32 = vld [vmem:[#allocation8 + $0x18] sm:$0xff] }
 0x1a3   : > { %v788_v45 = vpop.permute.xlu1 %787  ;;  %v786_v61 = vpop.permute.xlu0 %785 }
 0x1a4   : > { %v789_v10 = vsel %vm359_vm10, %v786_v61, %v788_v45  ;;  %v790_v20 = vsel %vm359_vm10, %v788_v45, %v786_v61 }
 0x1a5   : > { %v823_v27 = vsel %vm386_vm5, %v789_v10, 0.0  ;;  %v824_v6 = vsel %vm386_vm5, %v790_v20, 0.0 }
 0x1a6   : > { %v4867_v9 = vmul.f32 %v823_v27, %v4462_v59  ;;  %v4870_v28 = vmul.f32 %v824_v6, %v4464_v60 }
 0x1a7   : > { %v960_v33 = vpop.permute.xlu1 %959  ;;  %v958_v11 = vpop.permute.xlu0 %957 }
 0x1a8   : > { %v961_v7 = vsel %vm310_vm4, %v958_v11, %v960_v33  ;;  %v962_v1 = vsel %vm310_vm4, %v960_v33, %v958_v11  ;;  %1626 = vmatprep.subr.mxu1 %v4870_v28  ;;  %v4899_v11 = vld [vmem:[#allocation8 + $0x10] sm:$0xff] }
 0x1a9   : > { %1627 = vmatpush1.msra.mxu1 %v4867_v9  ;;  %v1029_v12 = vsel %vm386_vm5, %v962_v1, %v1007_v50  ;;  %v1030_v19 = vsel %vm386_vm5, %v961_v7, %v1008_v53 }
 0x1aa   : > { %3300 = vmatmul.mubr.msk.f32.vlgmr.msra.gmra.mrb[4].mxu1 %vm1259_vm1, %v4882_v62  ;;  %v1039_v55 = vmul.f32 %v1029_v12, %v4281_v35  ;;  %v1040_v33 = vmul.f32 %v4896_v31, %v1030_v19 }
 0x1ab   : > { %v972_v45 = vpop.permute.xlu1 %971  ;;  %v970_v61 = vpop.permute.xlu0 %969  ;;  %1824 = vmatprep.mubr.f32.mxu1 %v5262_v26 }
 0x1ac   : > { %v973_v10 = vsel %vm324_vm6, %v970_v61, %v972_v45  ;;  %v974_v20 = vsel %vm324_vm6, %v972_v45, %v970_v61 }
 0x1ad   : > { %v1031_v27 = vsel %vm386_vm5, %v974_v20, %v1013_v34  ;;  %v1032_v6 = vsel %vm386_vm5, %v973_v10, %v1014_v37 }
 0x1ae   : > { %v1041_v15 = vmul.f32 %v4899_v11, %v1031_v27  ;;  %v1042_v7 = vmul.f32 %v4902_v32, %v1032_v6 }
 0x1af   : > { %v984_v1 = vpop.permute.xlu1 %983  ;;  %v982_v50 = vpop.permute.xlu0 %981 }
 0x1b0   : > { %v4905_v53 = vpack.c.bf16 %v1041_v15, %v1039_v55  ;;  %v4907_v34 = vpack.c.bf16 %v1042_v7, %v1040_v33  ;;  %v985_v35 = vsel %vm338_vm7, %v982_v50, %v984_v1  ;;  %v986_v19 = vsel %vm338_vm7, %v984_v1, %v982_v50 }
 0x1b1   : > { %v1019_v45 = vrot.slane %v985_v35, 4  ;;  %v1020_v61 = vrot.slane %v986_v19, 4 }
 0x1b2   : > { %5263 = vst [vmem:[#allocation17_spill] sm:$0xff] %v4905_v53  ;;  %3396 = vmatprep.subr.bf16.mxu1 %v4907_v34 }
 0x1b3   : > { %v996_v37 = vpop.permute.xlu1 %995  ;;  %v994_v12 = vpop.permute.xlu0 %993  ;;  %3398 = vmatpush1.bf16.msra.mxu1 %v4905_v53  ;;  %v1033_v1 = vsel %vm386_vm5, %v4460_v54, %v1019_v45 }
 0x1b4   : > { %v997_v27 = vsel %vm352_vm8, %v994_v12, %v996_v37  ;;  %v998_v6 = vsel %vm352_vm8, %v996_v37, %v994_v12  ;;  %v1034_v37 = vsel %vm386_vm5, %v4478_v63, %v1020_v61  ;;  %v1043_v54 = vmul.f32 %v1033_v1, %v4372_v41 }
 0x1b5   : > { %v1025_v12 = vrot.slane %v997_v27, 4  ;;  %v1026_v19 = vrot.slane %v998_v6, 4  ;;  %v4953_v6 = vld [vmem:[#allocation6] sm:$0xff] }
 0x1b7   : > { %v895_v10 = vpop.permute.xlu1 %894  ;;  %v893_v20 = vpop.permute.xlu0 %892 }
 0x1b8   : > { %v896_v55 = vsel %vm359_vm10, %v893_v20, %v895_v10  ;;  %v897_v33 = vsel %vm359_vm10, %v895_v10, %v893_v20 }
 0x1b9   : > { %v930_v15 = vsel %vm386_vm5, %v896_v55, 0.0  ;;  %v931_v7 = vsel %vm386_vm5, %v897_v33, 0.0 }
 0x1ba   : > { %v4928_v50 = vmul.f32 %v930_v15, %v4462_v59  ;;  %v4931_v35 = vmul.f32 %v931_v7, %v4464_v60 }
 0x1bb   : > { %v990_v53 = vpop.permute.xlu1 %989  ;;  %v988_v10 = vpop.permute.xlu0 %987 }
 0x1bc   : > { %v991_v20 = vsel %vm345_vm9, %v988_v10, %v990_v53  ;;  %v992_v55 = vsel %vm345_vm9, %v990_v53, %v988_v10  ;;  %1697 = vmatprep.subr.mxu0 %v4931_v35  ;;  %v1044_v53 = vmul.f32 %v1034_v37, %v4374_v46 }
 0x1bd   : > { %v1035_v45 = vsel %vm386_vm5, %v991_v20, %v1025_v12  ;;  %v1036_v33 = vsel %vm386_vm5, %v992_v55, %v1026_v19  ;;  %1698 = vmatpush1.msra.mxu0 %v4928_v50  ;;  %v5265_v19 = vld [vmem:[#allocation15_spill] sm:$0xff] }
 0x1be   : > { %v1045_v63 = vmul.f32 %v1035_v45, %v4380_v52  ;;  %v1046_v61 = vmul.f32 %v1036_v33, %v4376_v47  ;;  %3301 = vmatmul.mubr.msk.f32.vlgmr.msra.gmra.mrb[6].mxu0 %vm1259_vm1, %v4882_v62  ;;  %3337 = vmatprep.subr.mxu0 %v5262_v26 }
 0x1bf   : > { %3338 = vmatpush3.msra.mxu0 %v5262_v26  ;;  %v1002_v41 = vpop.permute.xlu1 %1001  ;;  %v1000_v27 = vpop.permute.xlu0 %999  ;;  %3339 = vmatprep.mubr.msk.f32.mxu0 %vm3847_vm0, %v5262_v26 }
 0x1c0   : > { %v4955_v15 = vpack.c.bf16 %v1045_v63, %v1043_v54  ;;  %v1003_v47 = vsel %vm359_vm10, %v1000_v27, %v1002_v41  ;;  %v1004_v52 = vsel %vm359_vm10, %v1002_v41, %v1000_v27  ;;  %3342 = vmatprep.subr.mxu0 %v5262_v26  ;;  %v4962_v46 = vpack.c.bf16 %v1046_v61, %v1044_v53 }
 0x1c1   : > { %v1037_v7 = vsel %vm386_vm5, %v1003_v47, 0.0  ;;  %v1038_v1 = vsel %vm386_vm5, %v1004_v52, 0.0 }
 0x1c2   : > { %v4967_v37 = vmul.f32 %v1038_v1, %v4464_v60  ;;  %3400 = vmatprep.subr.bf16.mxu1 %v4962_v46  ;;  %3340 = vmatmul.mubr.msk.f32.vlgmr.msra.gmra.mrb[0].mxu0 %vm1259_vm1, %v4953_v6  ;;  %v4973_v12 = vmul.f32 %v1037_v7, %v4462_v59 }
 0x1c3   : > { %3343 = vmatpush3.msra.mxu0 %v5262_v26  ;;  %3402 = vmatpush1.bf16.msra.mxu1 %v4955_v15  ;;  %v1073_v59 = vpop.permute.xlu1 %1072  ;;  %v1071_v60 = vpop.permute.xlu0 %1070 }
 0x1c4   : > { %3404 = vmatprep.subr.bf16.mxu0 %v4300_v48  ;;  %3344 = vmatprep.mubr.msk.f32.mxu0 %vm3847_vm0, %v5262_v26 }
 0x1c5   : > { %1768 = vmatprep.subr.mxu1 %v4967_v37 }
 0x1c6   : > { %3345 = vmatmul.mubr.msk.f32.vlgmr.msra.gmra.mrb[8].mxu0 %vm1259_vm1, %v4953_v6 }
 0x1c7   : > { %3406 = vmatpush1.bf16.msra.mxu0 %v4302_v49  ;;  %1769 = vmatpush1.msra.mxu1 %v4973_v12  ;;  %v1085_v10 = vpop.permute.xlu1 %1084  ;;  %v1083_v20 = vpop.permute.xlu0 %1082 }
 0x1c8   : > { %3408 = vmatprep.subr.bf16.mxu0 %v4408_v16  ;;  %3412 = vmatprep.subr.bf16.mxu1 %v4388_v57 }
 0x1c9   : > { %3302 = vmatmul.mubr.msk.f32.vlgmr.msra.gmra.mrb[6].mxu1 %vm1259_vm1, %v4882_v62  ;;  %2040 = vmatprep.mubr.f32.mxu0 %v5262_v26  ;;  %v5264_v62 = vld [vmem:[#allocation16_spill] sm:$0xff] }
 0x1ca   : > { %3414 = vmatpush1.bf16.msra.mxu1 %v4390_v58  ;;  %2111 = vmatprep.mubr.f32.mxu1 %v5262_v26 }
 0x1cb   : > { %3410 = vmatpush1.bf16.msra.mxu0 %v4410_v17  ;;  %3416 = vmatprep.subr.bf16.mxu1 %v4444_v43  ;;  %v1067_v55 = vpop.permute.xlu1 %1066  ;;  %v1065_v54 = vpop.permute.xlu0 %1064 }
 0x1cc   : > { %1984 = vmatprep.subr.mxu0 %v4488_v18 }
 0x1ce   : > { %3418 = vmatpush1.bf16.msra.mxu1 %v4446_v44 }
 0x1cf   : > { %1985 = vmatpush1.msra.mxu0 %v4485_v13  ;;  %2055 = vmatprep.subr.mxu1 %v4563_v30  ;;  %v1079_v45 = vpop.permute.xlu1 %1078 }
 0x1d0   : > { %3420 = vmatprep.subr.bf16.mxu0 %v4525_v0  ;;  %3305 = vmatmul.mubr.msk.f32.vlgmr.msra.gmra.mrb[2].mxu0 %vm1259_vm1, %v4953_v6 }
 0x1d1   : > { %3422 = vmatpush1.bf16.msra.mxu0 %v4523_v56  ;;  %2182 = vmatprep.mubr.f32.mxu0 %v5262_v26 }
 0x1d2   : > { %2056 = vmatpush1.msra.mxu1 %v4560_v29  ;;  %3424 = vmatprep.subr.bf16.mxu0 %v4643_v25 }
 0x1d3   : > { %3428 = vmatprep.subr.bf16.mxu1 %v4619_v51  ;;  %3306 = vmatmul.mubr.msk.f32.vlgmr.msra.gmra.mrb[2].mxu1 %vm1259_vm1, %v4953_v6 }
 0x1d4   : > { %3430 = vmatpush1.bf16.msra.mxu1 %v4613_v40  ;;  %2253 = vmatprep.mubr.f32.mxu1 %v5262_v26 }
 0x1d5   : > { %3426 = vmatpush1.bf16.msra.mxu0 %v4637_v22  ;;  %3432 = vmatprep.subr.bf16.mxu1 %v4679_v23 }
 0x1d6   : > { %2126 = vmatprep.subr.mxu0 %v4709_v39 }
 0x1d8   : > { %3434 = vmatpush1.bf16.msra.mxu1 %v4677_v21 }
 0x1d9   : > { %2127 = vmatpush1.msra.mxu0 %v4706_v38  ;;  %2197 = vmatprep.subr.mxu1 %v4764_v3 }
 0x1da   : > { %3436 = vmatprep.subr.bf16.mxu0 %v5264_v62  ;;  %3307 = vmatmul.mubr.msk.f32.vlgmr.msra.gmra.mrb[4].mxu0 %vm1259_vm1, %v4953_v6 }
 0x1db   : > { %3438 = vmatpush1.bf16.msra.mxu0 %v5265_v19  ;;  %2324 = vmatprep.mubr.f32.mxu0 %v5262_v26 }
 0x1dc   : > { %2198 = vmatpush1.msra.mxu1 %v4761_v2  ;;  %3440 = vmatprep.subr.bf16.mxu0 %v4828_v4 }
 0x1dd   : > { %3444 = vmatprep.subr.bf16.mxu1 %v4809_v36  ;;  %3308 = vmatmul.mubr.msk.f32.vlgmr.msra.gmra.mrb[4].mxu1 %vm1259_vm1, %v4953_v6 }
 0x1de   : > { %3446 = vmatpush1.bf16.msra.mxu1 %v4803_v8  ;;  %2395 = vmatprep.mubr.f32.mxu1 %v5262_v26 }
 0x1df   : > { %3442 = vmatpush1.bf16.msra.mxu0 %v4822_v42  ;;  %3448 = vmatprep.subr.bf16.mxu1 %v4852_v24 }
 0x1e0   : > { %2268 = vmatprep.subr.mxu0 %v4870_v28 }
 0x1e2   : > { %3450 = vmatpush1.bf16.msra.mxu1 %v4850_v5 }
 0x1e3   : > { %2269 = vmatpush1.msra.mxu0 %v4867_v9  ;;  %2339 = vmatprep.subr.mxu1 %v4931_v35 }
 0x1e4   : > { %3452 = vmatprep.subr.bf16.mxu0 %v4300_v48  ;;  %3309 = vmatmul.mubr.msk.f32.vlgmr.msra.gmra.mrb[6].mxu0 %vm1259_vm1, %v4953_v6  ;;  %v1077_v48 = vpop.permute.xlu0 %1076 }
 0x1e5   : > { %3454 = vmatpush1.bf16.msra.mxu0 %v4302_v49  ;;  %2551 = vmatprep.mubr.f32.mxu0 %v5262_v26  ;;  %v5049_v49 = vld [vmem:[#allocation6 + $0x10] sm:$0xff] }
 0x1e6   : > { %2340 = vmatpush1.msra.mxu1 %v4928_v50  ;;  %3456 = vmatprep.subr.bf16.mxu0 %v4408_v16 }
 0x1e7   : > { %3460 = vmatprep.subr.bf16.mxu1 %v4388_v57  ;;  %3310 = vmatmul.mubr.msk.f32.vlgmr.msra.gmra.mrb[6].mxu1 %vm1259_vm1, %v4953_v6  ;;  %v1091_v57 = vpop.permute.xlu1 %1090 }
 0x1e8   : > { %3462 = vmatpush1.bf16.msra.mxu1 %v4390_v58  ;;  %2622 = vmatprep.mubr.f32.mxu1 %v5262_v26  ;;  %v1089_v16 = vpop.permute.xlu0 %1088 }
 0x1e9   : > { %3458 = vmatpush1.bf16.msra.mxu0 %v4410_v17  ;;  %3464 = vmatprep.subr.bf16.mxu1 %v4444_v43  ;;  %v1074_v43 = vsel %vm317_vm3, %v1071_v60, %v1073_v59 }
 0x1ea   : > { %2495 = vmatprep.subr.mxu0 %v4488_v18  ;;  %v1087_v18 = vsel %vm331_vm2, %v1085_v10, %v1083_v20 }
 0x1eb   : > { %v1103_v58 = vpop.permute.xlu1 %1102 }
 0x1ec   : > { %3466 = vmatpush1.bf16.msra.mxu1 %v4446_v44  ;;  %v1101_v17 = vpop.permute.xlu0 %1100  ;;  %v1075_v44 = vsel %vm317_vm3, %v1073_v59, %v1071_v60 }
 0x1ed   : > { %2496 = vmatpush1.msra.mxu0 %v4485_v13  ;;  %2566 = vmatprep.subr.mxu1 %v4563_v30  ;;  %v1086_v13 = vsel %vm331_vm2, %v1083_v20, %v1085_v10  ;;  %v1105_v30 = vsel %vm352_vm8, %v1103_v58, %v1101_v17  ;;  %v1104_v63 = vsel %vm352_vm8, %v1101_v17, %v1103_v58  ;;  %v3655_v58 = vld [vmem:[#allocation8 + $0x20] sm:$0xff] }
 0x1ee   : > { %3311 = vmatmul.mubr.msk.f32.vlgmr.msra.gmra.mrb[10].mxu0 %vm1259_vm1, %v5049_v49  ;;  %3468 = vmatprep.subr.bf16.mxu0 %v4525_v0  ;;  %v1114_v0 = vrot.slane %v1075_v44, 4  ;;  %v1133_v61 = vrot.slane %v1105_v30, 4  ;;  %v1132_v7 = vrot.slane %v1104_v63, 4 }
 0x1ef   : > { %3470 = vmatpush1.bf16.msra.mxu0 %v4523_v56  ;;  %2693 = vmatprep.mubr.f32.mxu0 %v5262_v26  ;;  %v1093_v56 = vsel %vm338_vm7, %v1091_v57, %v1089_v16 }
 0x1f0   : > { %2567 = vmatpush1.msra.mxu1 %v4560_v29  ;;  %3472 = vmatprep.subr.bf16.mxu0 %v4643_v25  ;;  %v1115_v29 = vrot.slane %v1074_v43, 4  ;;  %v1069_v25 = vsel %vm310_vm4, %v1067_v55, %v1065_v54  ;;  %v1127_v33 = vrot.slane %v1093_v56, 4  ;;  %v3656_v43 = vld [vmem:[#allocation8 + $0x30] sm:$0xff] }
 0x1f1   : > { %3312 = vmatmul.mubr.msk.f32.vlgmr.msra.gmra.mrb[8].mxu1 %vm1259_vm1, %v5049_v49  ;;  %3476 = vmatprep.subr.bf16.mxu1 %v4619_v51  ;;  %v1121_v51 = vrot.slane %v1086_v13, 4  ;;  %v1136_v53 = vsel %vm386_vm5, %v1069_v25, %v1114_v0  ;;  %v3657_v13 = vld [vmem:[#allocation8 + $0x48] sm:$0xff] }
 0x1f2   : > { %3478 = vmatpush1.bf16.msra.mxu1 %v4613_v40  ;;  %2764 = vmatprep.mubr.f32.mxu1 %v5262_v26  ;;  %v1120_v40 = vrot.slane %v1087_v18, 4  ;;  %v3658_v18 = vld [vmem:[#allocation8 + $0x40] sm:$0xff] }
 0x1f3   : > { %3474 = vmatpush1.bf16.msra.mxu0 %v4637_v22  ;;  %3480 = vmatprep.subr.bf16.mxu1 %v4679_v23  ;;  %v1068_v22 = vsel %vm310_vm4, %v1065_v54, %v1067_v55  ;;  %v1095_v23 = vpop.permute.xlu0 %1094 }
 0x1f4   : > { %2637 = vmatprep.subr.mxu0 %v4709_v39  ;;  %v1081_v39 = vsel %vm324_vm6, %v1079_v45, %v1077_v48  ;;  %v1137_v27 = vsel %vm386_vm5, %v1068_v22, %v1115_v29 }
 0x1f5   : > { %v1138_v6 = vsel %vm386_vm5, %v1081_v39, %v1120_v40  ;;  %v1147_v10 = vmul.f32 %v4896_v31, %v1137_v27 }
 0x1f6   : > { %3482 = vmatpush1.bf16.msra.mxu1 %v4677_v21  ;;  %v1097_v21 = vpop.permute.xlu1 %1096  ;;  %v1148_v20 = vmul.f32 %v4899_v11, %v1138_v6 }
 0x1f7   : > { %2638 = vmatpush1.msra.mxu0 %v4706_v38  ;;  %2708 = vmatprep.subr.mxu1 %v4764_v3  ;;  %v1080_v38 = vsel %vm324_vm6, %v1077_v48, %v1079_v45  ;;  %v1092_v3 = vsel %vm338_vm7, %v1089_v16, %v1091_v57  ;;  %v1099_v41 = vsel %vm345_vm9, %v1097_v21, %v1095_v23  ;;  %v1107_v60 = vpop.permute.xlu0 %1106  ;;  %v3653_v45 = vld [vmem:[#allocation8 + $0x28] sm:$0xff]  ;;  %v3654_v57 = vld [vmem:[#allocation8 + $0x38] sm:$0xff] }
 0x1f8   : > { %3313 = vmatmul.mubr.msk.f32.vlgmr.msra.gmra.mrb[2].mxu0 %vm1259_vm1, %v5049_v49  ;;  %3484 = vmatprep.subr.bf16.mxu0 %v5264_v62  ;;  %v1139_v47 = vsel %vm386_vm5, %v1080_v38, %v1121_v51  ;;  %v1126_v52 = vrot.slane %v1092_v3, 4  ;;  %v1098_v1 = vsel %vm345_vm9, %v1095_v23, %v1097_v21  ;;  %v1143_v59 = vsel %vm386_vm5, %v1099_v41, %v1133_v61  ;;  %v3652_v62 = vld [vmem:[#allocation8] sm:$0xff] }
 0x1f9   : > { %3486 = vmatpush1.bf16.msra.mxu0 %v5265_v19  ;;  %2835 = vmatprep.mubr.f32.mxu0 %v5262_v26  ;;  %v1146_v19 = vmul.f32 %v3652_v62, %v1136_v53  ;;  %v1153_v16 = vmul.f32 %v3654_v57, %v1143_v59 }
 0x1fa   : > { %2709 = vmatpush1.msra.mxu1 %v4761_v2  ;;  %3488 = vmatprep.subr.bf16.mxu0 %v4828_v4  ;;  %v5266_v2 = vld [vmem:[#allocation14_spill] sm:$0xff] }
 0x1fb   : > { %3314 = vmatmul.mubr.msk.f32.vlgmr.msra.gmra.mrb[2].mxu1 %vm1259_vm1, %v5049_v49  ;;  %3492 = vmatprep.subr.bf16.mxu1 %v4809_v36  ;;  %v1141_v4 = vsel %vm386_vm5, %v5266_v2, %v1127_v33  ;;  %v1109_v36 = vpop.permute.xlu1 %1108  ;;  %v3509_v11 = vpack.c.bf16 %v1148_v20, %v1146_v19 }
 0x1fc   : > { %3494 = vmatpush1.bf16.msra.mxu1 %v4803_v8  ;;  %2906 = vmatprep.mubr.f32.mxu1 %v5262_v26  ;;  %v1151_v48 = vmul.f32 %v3653_v45, %v1141_v4  ;;  %v1111_v31 = vsel %vm359_vm10, %v1109_v36, %v1107_v60 }
 0x1fd   : > { %3490 = vmatpush1.bf16.msra.mxu0 %v4822_v42  ;;  %3496 = vmatprep.subr.bf16.mxu1 %v4852_v24  ;;  %v1149_v42 = vmul.f32 %v4902_v32, %v1139_v47  ;;  %v5267_v24 = vld [vmem:[#allocation13_spill] sm:$0xff]  ;;  %v1145_v44 = vsel %vm386_vm5, %v1111_v31, 0.0 }
 0x1fe   : > { %2779 = vmatprep.subr.mxu0 %v4870_v28  ;;  %v1400_v8 = vpop.f32.mrb[0].mxu1  ;;  %v1140_v54 = vsel %vm386_vm5, %v5267_v24, %v1126_v52  ;;  %v1142_v28 = vsel %vm386_vm5, %v1098_v1, %v1132_v7 }
 0x1ff   : > { %v5125_v55 = vpop.f32.mrb[1].mxu1  ;;  %v3507_v32 = vpack.c.bf16 %v1149_v42, %v1147_v10  ;;  %v1150_v17 = vmul.f32 %v3655_v58, %v1140_v54 }
 0x200   : > { %3498 = vmatpush1.bf16.msra.mxu1 %v4850_v5  ;;  %v5268_v5 = vld [vmem:[#allocation17_spill] sm:$0xff] }
 0x201   : > { %2780 = vmatpush1.msra.mxu0 %v4867_v9  ;;  %2850 = vmatprep.subr.mxu1 %v4931_v35  ;;  %v1152_v9 = vmul.f32 %v3656_v43, %v1142_v28  ;;  %v1110_v35 = vsel %vm359_vm10, %v1107_v60, %v1109_v36 }
 0x202   : > { %3315 = vmatmul.mubr.msk.f32.vlgmr.msra.gmra.mrb[4].mxu0 %vm1259_vm1, %v5049_v49  ;;  %3500 = vmatprep.subr.bf16.mxu0 %v4907_v34  ;;  %v3511_v34 = vpack.c.bf16 %v1153_v16, %v1151_v48 }
 0x203   : > { %3502 = vmatpush1.bf16.msra.mxu0 %v5268_v5  ;;  %2977 = vmatprep.mubr.f32.mxu0 %v5262_v26  ;;  %v3513_v14 = vpack.c.bf16 %v1152_v9, %v1150_v17 }
 0x204   : > { %2851 = vmatpush1.msra.mxu1 %v4928_v50  ;;  %3504 = vmatprep.subr.bf16.mxu0 %v4962_v46  ;;  %v1144_v50 = vsel %vm386_vm5, %v1110_v35, 0.0  ;;  %v1155_v46 = vmul.f32 %v3657_v13, %v1145_v44 }
 0x205   : > { %3316 = vmatmul.mubr.msk.f32.vlgmr.msra.gmra.mrb[4].mxu1 %vm1259_vm1, %v5049_v49  ;;  %3508 = vmatprep.subr.bf16.mxu1 %v3507_v32  ;;  %v1154_v56 = vmul.f32 %v3658_v18, %v1144_v50 }
 0x206   : > { %3510 = vmatpush1.bf16.msra.mxu1 %v3509_v11  ;;  %3048 = vmatprep.mubr.f32.mxu1 %v5262_v26 }
 0x207   : > { %3506 = vmatpush1.bf16.msra.mxu0 %v4955_v15  ;;  %3512 = vmatprep.subr.bf16.mxu1 %v3511_v34 }
 0x208   : > { %2921 = vmatprep.subr.mxu0 %v4967_v37 }
 0x20a   : > { %3514 = vmatpush1.bf16.msra.mxu1 %v3513_v14 }
 0x20b   : > { %2922 = vmatpush1.msra.mxu0 %v4973_v12  ;;  %2992 = vmatprep.subr.mxu1 %v1155_v46 }
 0x20c   : > { %3317 = vmatmul.mubr.msk.f32.vlgmr.msra.gmra.mrb[6].mxu0 %vm1259_vm1, %v5049_v49 }
 0x20e   : > { %2993 = vmatpush1.msra.mxu1 %v1154_v56  ;;  %v3075_v40 = vpop.permute.xlu0 %3074 }
 0x20f   : > { %3318 = vmatmul.mubr.msk.f32.vlgmr.msra.gmra.mrb[6].mxu1 %vm1259_vm1, %v5049_v49 }
 0x295   : > { %v1900_v26 = vpop.f32.mrb[0].mxu0 }
 0x296   : > { %v3341_v15 = vpop.f32.mrb[1].mxu0 }
 0x299   : > { %v1971_v0 = vpop.f32.mrb[8].mxu0 }
 0x29a   : > { %v1972_v29 = vadd.f32 %v1971_v0, %v1400_v8  ;;  %v3346_v30 = vpop.f32.mrb[9].mxu0 }
 0x2c1   : > { %v2553_v37 = vpop.f32.mrb[10].mxu0 }
 0x2c2   : > { %v3055_v51 = vadd.f32 %v2553_v37, %v1900_v26  ;;  %v2555_v22 = vpop.f32.mrb[11].mxu0 }
 0x2c3   : > { %v3078_v25 = vadd.f32 %v3075_v40, %v2555_v22 }
 0x2c4   : > { %v3077_v12 = vadd.f32 %v3075_v40, %v3055_v51  ;;  %v2624_v21 = vpop.f32.mrb[8].mxu1 }
 0x2c5   : > { %v3057_v23 = vadd.f32 %v2624_v21, %v1972_v29  ;;  %3094 = vst [vmem:[%s5157_s14 + $0x8] sm:$0xff] %v3078_v25  ;;  %v2626_v49 = vpop.f32.mrb[9].mxu1 }
 0x2c6   : > { %3093 = vst [vmem:[%s5157_s14] sm:$0xff] %v3077_v12  ;;  %v3058_v38 = vadd.f32 %v2626_v49, %v5125_v55 }
 0x2c7   : > { %v3079_v39 = vadd.f32 %v3075_v40, %v3057_v23 }
 0x2c8   : > { %v3080_v3 = vadd.f32 %v3075_v40, %v3058_v38 }
 0x2c9   : > { %3095 = vst [vmem:[%s5157_s14 + $0x10] sm:$0xff] %v3079_v39 }
 0x2ca   : > { %3096 = vst [vmem:[%s5157_s14 + $0x18] sm:$0xff] %v3080_v3 }
 0x2cb   : > { %v2695_v33 = vpop.f32.mrb[2].mxu0 }
 0x2cc   : > { %v3081_v63 = vadd.f32 %v3075_v40, %v2695_v33  ;;  %v2697_v61 = vpop.f32.mrb[3].mxu0 }
 0x2cd   : > { %v3082_v53 = vadd.f32 %v3075_v40, %v2697_v61 }
 0x2ce   : > { %3097 = vst [vmem:[%s5157_s14 + $0x20] sm:$0xff] %v3081_v63  ;;  %v2766_v41 = vpop.f32.mrb[2].mxu1 }
 0x2cf   : > { %3098 = vst [vmem:[%s5157_s14 + $0x28] sm:$0xff] %v3082_v53  ;;  %v3083_v27 = vadd.f32 %v3075_v40, %v2766_v41  ;;  %v2768_v6 = vpop.f32.mrb[3].mxu1 }
 0x2d0   : > { %v3084_v47 = vadd.f32 %v3075_v40, %v2768_v6 }
 0x2d1   : > { %3099 = vst [vmem:[%s5157_s14 + $0x30] sm:$0xff] %v3083_v27 }
 0x2d2   : > { %3100 = vst [vmem:[%s5157_s14 + $0x38] sm:$0xff] %v3084_v47 }
 0x2d5   : > { %v2837_v52 = vpop.f32.mrb[4].mxu0 }
 0x2d6   : > { %v3085_v2 = vadd.f32 %v3075_v40, %v2837_v52  ;;  %v2839_v4 = vpop.f32.mrb[5].mxu0 }
 0x2d7   : > { %v3086_v7 = vadd.f32 %v3075_v40, %v2839_v4 }
 0x2d8   : > { %3101 = vst [vmem:[%s5157_s14 + $0x40] sm:$0xff] %v3085_v2  ;;  %v2908_v36 = vpop.f32.mrb[4].mxu1 }
 0x2d9   : > { %3102 = vst [vmem:[%s5157_s14 + $0x48] sm:$0xff] %v3086_v7  ;;  %v3087_v1 = vadd.f32 %v3075_v40, %v2908_v36  ;;  %v2910_v59 = vpop.f32.mrb[5].mxu1 }
 0x2da   : > { %v3088_v60 = vadd.f32 %v3075_v40, %v2910_v59 }
 0x2db   : > { %3103 = vst [vmem:[%s5157_s14 + $0x50] sm:$0xff] %v3087_v1 }
 0x2dc   : > { %3104 = vst [vmem:[%s5157_s14 + $0x58] sm:$0xff] %v3088_v60 }
 0x2df   : > { %v2979_v8 = vpop.f32.mrb[6].mxu0 }
 0x2e0   : > { %v3089_v62 = vadd.f32 %v3075_v40, %v2979_v8  ;;  %v2981_v19 = vpop.f32.mrb[7].mxu0 }
 0x2e1   : > { %v3090_v10 = vadd.f32 %v3075_v40, %v2981_v19 }
 0x2e2   : > { %3105 = vst [vmem:[%s5157_s14 + $0x60] sm:$0xff] %v3089_v62  ;;  %v3050_v20 = vpop.f32.mrb[6].mxu1 }
 0x2e3   : > { %3106 = vst [vmem:[%s5157_s14 + $0x68] sm:$0xff] %v3090_v10  ;;  %v3091_v42 = vadd.f32 %v3075_v40, %v3050_v20  ;;  %v3052_v55 = vpop.f32.mrb[7].mxu1 }
 0x2e4   : > { %v3092_v24 = vadd.f32 %v3075_v40, %v3052_v55 }
 0x2e5   : > { %3107 = vst [vmem:[%s5157_s14 + $0x70] sm:$0xff] %v3091_v42 }
 0x2e6   : > { %3108 = vst [vmem:[%s5157_s14 + $0x78] sm:$0xff] %v3092_v24 }
 0x2e7   : > { %3758 = shalt.err (!%p3755_p11)
}
 0x2e8   : > { %s3759_s30 = scalar_lea.hbm %s5179_s21, 2048  ;;  %s3763_s9 = scalar_lea.hbm %s5234_s4, 4096 }
 0x2e9   : > { %p3760_p0 = scmp.ne.s32.totalorder %s5179_s21, %s3759_s30  ;;  %p3764_p6 = scmp.lt.u32.totalorder %s5179_s21, %s5234_s4 }
 0x2ea   : > { %p3765_p7 = scmp.lt.u32.totalorder %s3763_s9, %s3759_s30  ;;  %p3767_p8 = scmp.lt.u32.totalorder %s3759_s30, %s5179_s21 }
 0x2eb   : > { %p3761_p4 = pnand %p3760_p0, %p5269_p12 }
 0x2ec   : > { %p3766_p2 = por %p3765_p7, %p3764_p6 }
 0x2ed   : > { %p3762_p13 = pneg %p3761_p4 }
 0x2ee   : > { %p3768_p1 = por %p3767_p8, %p3766_p2 }
 0x2f0   : > { %p3769_p10 = pnand %p3768_p1, %p3762_p13 }
 0x2f2   : > { %3772 = shalt.err (!%p3769_p10)
}
 0x2f3   : > { %3551 = dma.vmem_to_hbm [thread:$0]  (%p5269_p12), %s5181_s24, 2048, %s5179_s21, %s3155_s18  }
 0x2f4 PF: > { %s3183_s14 = sand.u32 1, %s3811_s15   ;;  %p5270_p3 = scmp.ne.s32.totalorder %s5251_s26, 0 }
 0x2f5   : > { %p5271_p5 = scmp.ge.s32.totalorder %s3831_s20, 2  ;;  %s3184_s29 = scalar_lea.sflag [#allocation5], %s3183_s14 }
 0x2f7   : > { %p3565_p9 = pnand %p5271_p5, %p5270_p3 }
 0x2f9   : > { %3806 = dma.done.wait (!%p3565_p9), %s3184_s29, 2048  }
 0x2fa   : > { %3808 = vsyncadd (!%p3565_p9), %s3184_s29, 4294965248  ;;  %s21_s20 = sadd.s32 1, %s3831_s20   ;;  %s5272_s15 = smov %s3815_s16 }
 0x2fb   : > { %p18_p11 = scmp.ge.s32.totalorder %s21_s20, 4   ;;  %s5273_s16 = smov %s3819_s17 }
 0x2fc   : > { %s5274_s17 = smov %s4022_s13  ;;  %s5275_s18 = smov %s3827_s19 }
 0x2fd   : > { %s5276_s19 = smov %s5278_s8  ;;  %20 = sbr.rel (!%p18_p11) target bundleno = 7 (0x7), region = 106 }
 0x304   :  { %3189 = vsyncpa [#allocation4], 1 }
 0x305   :  { %3191 = vsyncpa [#allocation4 + $0x1], 1 }
 0x306   :  { %3192 = vsyncpa [#allocation7], 1 }
 0x307   :  { %3193 = vsyncpa [#allocation5], 1 }
 0x308   :  { %3195 = vsyncpa [#allocation5 + $0x1], 1 }

</bundles_post_ra>
